<compile_context>
chip_gen: v7x
topology: tpu7x:2x2x1
jax: 0.10.0
libtpu: 0.0.40
codegen_flags: <defaults>
</compile_context>

<pallas_src>
import jax
import jax.numpy as jnp
import numpy as np
from jax import lax
from jax.experimental import pallas as pl
from jax.experimental.pallas import tpu as pltpu

# ---- model hyperparameters (small, consistent with the module) --------------
B = 2            # batch
T = 8            # tgt_len
S = 8            # src_len   (selector constants assume T == S)
HID = 32         # hidden_dim
N_HEADS = 4
HEAD_DIM = HID // N_HEADS
FF = 64          # feedforward_dim
SCALE = float(HEAD_DIM) ** 0.5
EPS = 1e-5       # PyTorch LayerNorm default

HB = N_HEADS * B * S          # 64: rows of the head-block-diagonal K/V slabs

# (64, 176) constant/weight slab column offsets
_OFF_WFF2 = 0                               # [0:32)   w_ff2
_OFF_HSEL = HID                             # [32:64)  head_sel
_OFF_PREP = 2 * HID                         # [64:80)  P_rep
_OFF_OBD = 2 * HID + B * S                  # [80:144) block-diag ones
_OFF_ASEL = _OFF_OBD + HB                   # [144:176) attn compaction selector
_W64_WIDTH = _OFF_ASEL + N_HEADS * S        # 176

# (32, 320) weight slab column offsets
_OFF_QKV1 = 0            # [0:96)
_OFF_O1 = 3 * HID        # [96:128)
_OFF_Q2 = 4 * HID        # [128:160)
_OFF_KV2 = 5 * HID       # [160:224)
_OFF_O2 = 7 * HID        # [224:256)
_OFF_FF1 = 8 * HID       # [256:320)
_W32_WIDTH = _OFF_FF1 + FF


# =============================== kernel ======================================
def decoder_layer_kernel(x_ref, mfill_ref, bias_ref, w32_ref, w64_ref, out_ref):
    f32 = jnp.float32

    x_tgt = x_ref[:, 0:HID]             # (B*T, HID)
    x_src = x_ref[:, HID:2 * HID]       # (B*S, HID)

    # ---- constants packed in the (64,176) slab ------------------------------
    w_ff2 = w64_ref[:, _OFF_WFF2:_OFF_WFF2 + HID]           # (64, 32)
    head_sel = w64_ref[:, _OFF_HSEL:_OFF_HSEL + HID]         # (64, 32)
    p_rep = w64_ref[:, _OFF_PREP:_OFF_PREP + B * S]          # (64, 16)
    ones_bd = w64_ref[:, _OFF_OBD:_OFF_OBD + HB]             # (64, 64)
    attn_sel = w64_ref[:, _OFF_ASEL:_OFF_ASEL + N_HEADS * S]  # (64, 32)

    # ---- biases / LN params: one per row, lanes start at 0 ------------------
    b_qkv1 = bias_ref[0:1, 0:3 * HID]
    b_o1 = bias_ref[1:2, 0:HID]
    b_q2 = bias_ref[2:3, 0:HID]
    b_kv2 = bias_ref[3:4, 0:2 * HID]
    b_o2 = bias_ref[4:5, 0:HID]
    b_ff1 = bias_ref[5:6, 0:FF]
    b_ff2 = bias_ref[6:7, 0:HID]
    ln1_g = bias_ref[7:8, 0:HID]
    ln1_b = bias_ref[8:9, 0:HID]
    lnf_g = bias_ref[9:10, 0:HID]
    lnf_b = bias_ref[10:11, 0:HID]

    def layer_norm(x, g, b):
        mu = jnp.mean(x, axis=-1, keepdims=True)
        var = jnp.mean((x - mu) * (x - mu), axis=-1, keepdims=True)
        return (x - mu) * lax.rsqrt(var + EPS) * g + b

    def attention(q, k, v, mfill):
        # q: (B*T, HID) with 1/sqrt(head_dim) already folded into the Q weights.
        # k, v: (B*S, HID).  mfill: (B*T, HB); 0 = keep, -1e10 user-masked,
        # -1e30 cross-batch.
        # Head-block-diagonal K / V slabs via a constant replication matmul.
        kbd = jnp.dot(p_rep, k, preferred_element_type=jnp.float32) * head_sel
        vbd = jnp.dot(p_rep, v, preferred_element_type=jnp.float32) * head_sel
        energy = lax.dot_general(q, kbd, (((1,), (1,)), ((), ())),
                                 preferred_element_type=jnp.float32)  # (B*T, HB)
        energy = jnp.where(mfill == 0.0, energy, mfill)
        # Row-global max is a valid per-segment stabiliser (same constant for
        # every head segment of a row); masked fills underflow to exactly 0.
        # (A fully user-masked row would give 0/0 here — such rows do not occur
        #  for causal / key-padding masks; reference gives uniform weights.)
        rowmax = jnp.max(energy, axis=-1, keepdims=True)
        p = jnp.exp(energy - rowmax)
        # Per-head denominator, broadcast across the segment, on the MXU.
        denom = jnp.dot(p, ones_bd, preferred_element_type=jnp.float32)
        r = pl.reciprocal(denom, approx=True)
        r = r * (2.0 - denom * r)              # one Newton step -> full f32 acc.
        attn = p * r
        ctx = jnp.dot(attn, vbd, preferred_element_type=jnp.float32)  # (B*T, HID)
        return ctx, attn

    # --- self attention + residual + LN (dropout == identity, inference) -----
    qkv = jnp.dot(x_tgt, w32_ref[:, _OFF_QKV1:_OFF_QKV1 + 3 * HID],
                  preferred_element_type=f32) + b_qkv1
    ctx1, _ = attention(qkv[:, 0:HID], qkv[:, HID:2 * HID], qkv[:, 2 * HID:3 * HID],
                        mfill_ref[:, 0:HB])
    sa = jnp.dot(ctx1, w32_ref[:, _OFF_O1:_OFF_O1 + HID],
                 preferred_element_type=f32) + b_o1
    x = layer_norm(x_tgt + sa, ln1_g, ln1_b)

    # --- cross attention + residual + LN --------------------------------------
    # (reference reuses self_attn_layer_norm for both residuals;
    #  enc_attn_layer_norm is unused)
    q2 = jnp.dot(x, w32_ref[:, _OFF_Q2:_OFF_Q2 + HID],
                 preferred_element_type=f32) + b_q2
    kv2 = jnp.dot(x_src, w32_ref[:, _OFF_KV2:_OFF_KV2 + 2 * HID],
                  preferred_element_type=f32) + b_kv2
    ctx2, attn_w = attention(q2, kv2[:, 0:HID], kv2[:, HID:2 * HID],
                             mfill_ref[:, HB:2 * HB])
    ca = jnp.dot(ctx2, w32_ref[:, _OFF_O2:_OFF_O2 + HID],
                 preferred_element_type=f32) + b_o2
    x = layer_norm(x + ca, ln1_g, ln1_b)

    # --- positionwise feedforward + residual + LN -----------------------------
    h = jnp.maximum(
        jnp.dot(x, w32_ref[:, _OFF_FF1:_OFF_FF1 + FF],
                preferred_element_type=f32) + b_ff1, 0.0)
    ff = jnp.dot(h, w_ff2, preferred_element_type=f32) + b_ff2
    y = layer_norm(x + ff, lnf_g, lnf_b)

    # --- fold the cross-batch attention reduction into the kernel -------------
    # attn_w columns are h*(B*S)+b'*S+k; cross-batch weights are exactly 0, so
    # this matmul is an exact extraction of the b'==b block, compacted to
    # columns h*S+k.
    attn_c = jnp.dot(attn_w, attn_sel, preferred_element_type=f32)   # (B*T, NH*S)

    # one lane-dense (16,128) unmasked store: [ y | attn | 0-pad ]
    pad = jnp.zeros((B * T, 128 - HID - N_HEADS * S), f32)
    out_ref[...] = jnp.concatenate([y, attn_c, pad], axis=1)


# ====================== host-side constant construction ======================
def _selector_constants():
    r = np.arange(HB)
    head = r // (B * S)
    head_sel = (head[:, None] == (np.arange(HID)[None, :] // HEAD_DIM)).astype(np.float32)
    p_rep = ((r % (B * S))[:, None] == np.arange(B * S)[None, :]).astype(np.float32)
    ones_bd = (head[:, None] == head[None, :]).astype(np.float32)
    tgt_col = head * S + (r % S)
    attn_sel = (tgt_col[:, None] == np.arange(N_HEADS * S)[None, :]).astype(np.float32)
    return (jnp.asarray(head_sel), jnp.asarray(p_rep),
            jnp.asarray(ones_bd), jnp.asarray(attn_sel))


def _mfill(user_bqk, n_q, n_k):
    """Replacement-energy array: 0 = keep, -1e10 = user-masked, -1e30 = cross-batch."""
    rq = np.arange(B * n_q)
    rk = np.arange(B * n_k)
    b_r, q_r = rq // n_q, rq % n_q
    b_c, k_c = rk // n_k, rk % n_k
    same_b = b_r[:, None] == b_c[None, :]
    user = np.asarray(user_bqk)[b_r[:, None], q_r[:, None], k_c[None, :]]
    keep = same_b & (user != 0)
    fill = np.where(same_b, -1e10, -1e30).astype(np.float32)
    mfill = np.where(keep, np.float32(0.0), fill).astype(np.float32)  # (B*n_q, B*n_k)
    return np.tile(mfill, (1, N_HEADS))                               # cols head-major


def build_mfill_slab(tgt_mask, src_mask):
    """(16,128) mask-fill slab, built ONCE at setup (causal mask is static;
    rebuild only when the source padding mask changes)."""
    m_self = _mfill(np.asarray(tgt_mask[:, 0]), T, T)                             # (16,64)
    m_cross = _mfill(np.broadcast_to(np.asarray(src_mask[:, 0]), (B, T, S)), T, S)  # (16,64)
    return jnp.asarray(np.concatenate([m_self, m_cross], axis=1))


# ======================== deterministic parameter init =======================
def init_params(key):
    keys = jax.random.split(key, 32)
    k = iter(keys)

    def lin(kw, fan_in, fan_out):
        return jax.random.normal(kw, (fan_in, fan_out), jnp.float32) / jnp.sqrt(fan_in)

    p = {}
    for name in ["q1", "k1", "v1", "o1", "q2", "k2", "v2", "o2"]:
        p["w" + name] = lin(next(k), HID, HID)
        p["b" + name] = jax.random.normal(next(k), (1, HID), jnp.float32) * 0.02
    p["ln1_g"] = jnp.ones((1, HID), jnp.float32)
    p["ln1_b"] = jnp.zeros((1, HID), jnp.float32)
    p["lnf_g"] = jnp.ones((1, HID), jnp.float32)
    p["lnf_b"] = jnp.zeros((1, HID), jnp.float32)
    p["w_ff1"] = lin(next(k), HID, FF)
    p["b_ff1"] = jax.random.normal(next(k), (1, FF), jnp.float32) * 0.02
    p["w_ff2"] = lin(next(k), FF, HID)
    p["b_ff2"] = jax.random.normal(next(k), (1, HID), jnp.float32) * 0.02
    return p


def pack_params(p):
    """Pack all parameters + constants into 3 lane-dense slabs (done once)."""
    inv = jnp.float32(1.0 / SCALE)   # fold 1/sqrt(head_dim) into the Q projections
    w_qkv1 = jnp.concatenate([p["wq1"] * inv, p["wk1"], p["wv1"]], axis=1)
    b_qkv1 = jnp.concatenate([p["bq1"] * inv, p["bk1"], p["bv1"]], axis=1)
    w_kv2 = jnp.concatenate([p["wk2"], p["wv2"]], axis=1)
    b_kv2 = jnp.concatenate([p["bk2"], p["bv2"]], axis=1)

    w32 = jnp.concatenate(
        [w_qkv1, p["wo1"], p["wq2"] * inv, w_kv2, p["wo2"], p["w_ff1"]], axis=1)
    assert w32.shape == (HID, _W32_WIDTH)

    head_sel, p_rep, ones_bd, attn_sel = _selector_constants()
    w64 = jnp.concatenate([p["w_ff2"], head_sel, p_rep, ones_bd, attn_sel], axis=1)
    assert w64.shape == (HB, _W64_WIDTH)

    rows = [b_qkv1, p["bo1"], p["bq2"] * inv, b_kv2, p["bo2"],
            p["b_ff1"], p["b_ff2"], p["ln1_g"], p["ln1_b"], p["lnf_g"], p["lnf_b"]]

    def pad_row(v):
        return jnp.pad(v, ((0, 0), (0, 128 - v.shape[1])))

    bias = jnp.concatenate([pad_row(r) for r in rows]
                           + [jnp.zeros((16 - len(rows), 128), jnp.float32)], axis=0)
    assert bias.shape == (16, 128)
    return w32, w64, bias


# =============================== wrapper =====================================
@jax.jit
def decoder_layer(tgt, src, mfill_slab, w32, w64, bias):
    """tgt [B,T,HID], src [B,S,HID]; mfill_slab/w32/w64/bias are packed slabs.

    Returns (out [B,T,HID], attention [B,N_HEADS,T,S]).
    """
    assert T == S, "selector constants assume tgt_len == src_len"
    x_in = jnp.concatenate(
        [tgt.reshape(B * T, HID), src.reshape(B * S, HID)], axis=1)   # (16, 64)

    vmem = pl.BlockSpec(memory_space=pltpu.MemorySpace.VMEM)
    slab = pl.pallas_call(
        decoder_layer_kernel,
        out_shape=jax.ShapeDtypeStruct((B * T, 128), jnp.float32),
        in_specs=[vmem] * 5,
        out_specs=vmem,
    )(x_in, mfill_slab, bias, w32, w64)

    out = slab[:, 0:HID].reshape(B, T, HID)
    attn = slab[:, HID:HID + N_HEADS * S].reshape(B, T, N_HEADS, S).transpose(0, 2, 1, 3)
    return out, attn


# =========================== pure-JAX reference ==============================
def ref_decoder_layer(tgt, src, tgt_mask, src_mask, p):
    def layer_norm(x, g, b):
        mu = jnp.mean(x, -1, keepdims=True)
        var = jnp.mean((x - mu) ** 2, -1, keepdims=True)
        return (x - mu) / jnp.sqrt(var + EPS) * g[0] + b[0]

    def mha(q_in, kv_in, mask, wq, bq, wk, bk, wv, bv, wo, bo):
        Q = q_in @ wq + bq[0]
        K = kv_in @ wk + bk[0]
        V = kv_in @ wv + bv[0]
        Bn, Tq, _ = Q.shape
        Tk = K.shape[1]
        Qh = Q.reshape(Bn, Tq, N_HEADS, HEAD_DIM).transpose(0, 2, 1, 3)
        Kh = K.reshape(Bn, Tk, N_HEADS, HEAD_DIM).transpose(0, 2, 1, 3)
        Vh = V.reshape(Bn, Tk, N_HEADS, HEAD_DIM).transpose(0, 2, 1, 3)
        energy = jnp.einsum("bhqd,bhkd->bhqk", Qh, Kh) / SCALE
        energy = jnp.where(mask == 0.0, -1e10, energy)
        attn = jax.nn.softmax(energy, axis=-1)
        ctx = jnp.einsum("bhqk,bhkd->bhqd", attn, Vh)
        ctx = ctx.transpose(0, 2, 1, 3).reshape(Bn, Tq, HID)
        return ctx @ wo + bo[0], attn

    sa, _ = mha(tgt, tgt, tgt_mask, p["wq1"], p["bq1"], p["wk1"], p["bk1"],
                p["wv1"], p["bv1"], p["wo1"], p["bo1"])
    x = layer_norm(tgt + sa, p["ln1_g"], p["ln1_b"])
    ca, attn = mha(x, src, src_mask, p["wq2"], p["bq2"], p["wk2"], p["bk2"],
                   p["wv2"], p["bv2"], p["wo2"], p["bo2"])
    x = layer_norm(x + ca, p["ln1_g"], p["ln1_b"])
    h = jnp.maximum(x @ p["w_ff1"] + p["b_ff1"][0], 0.0)
    ff = h @ p["w_ff2"] + p["b_ff2"][0]
    y = layer_norm(x + ff, p["lnf_g"], p["lnf_b"])
    return y, attn


# ================================== main =====================================
if __name__ == "__main__":
    key = jax.random.PRNGKey(0)
    k_tgt, k_src, k_params = jax.random.split(key, 3)

    tgt = jax.random.normal(k_tgt, (B, T, HID), jnp.float32)
    src = jax.random.normal(k_src, (B, S, HID), jnp.float32)

    # causal target mask [B,1,T,T]; source mask [B,1,1,S] with one padded key
    causal = jnp.tril(jnp.ones((T, T), jnp.float32))
    tgt_mask = jnp.broadcast_to(causal, (B, 1, T, T))
    src_mask = jnp.ones((B, 1, 1, S), jnp.float32).at[1, 0, 0, S - 1].set(0.0)

    params = init_params(k_params)
    w32, w64, bias = pack_params(params)                  # packed once at setup
    mfill_slab = build_mfill_slab(tgt_mask, src_mask)     # built once at setup

    out, attn = decoder_layer(tgt, src, mfill_slab, w32, w64, bias)
    out = jax.block_until_ready(out)
    attn = jax.block_until_ready(attn)

    ref_out, ref_attn = ref_decoder_layer(tgt, src, tgt_mask, src_mask, params)
    assert out.shape == (B, T, HID) and attn.shape == (B, N_HEADS, T, S)
    assert jnp.allclose(out, ref_out, atol=1e-4, rtol=1e-4)
    assert jnp.allclose(attn, ref_attn, atol=1e-4, rtol=1e-4)

    print("KERNEL_OK")
</pallas_src>

<mosaic_0001>
module attributes {stable_mosaic.version = 11 : i64} {
  func.func @decoder_layer_kernel(%arg0: memref<16x64xf32, #tpu.memory_space<vmem>>, %arg1: memref<16x128xf32, #tpu.memory_space<vmem>>, %arg2: memref<16x128xf32, #tpu.memory_space<vmem>>, %arg3: memref<32x320xf32, #tpu.memory_space<vmem>>, %arg4: memref<64x176xf32, #tpu.memory_space<vmem>>, %arg5: memref<16x128xf32, #tpu.memory_space<vmem>>) attributes {dimension_semantics = [], scalar_prefetch = 0 : i64, scratch_operands = 0 : i64, tpu.core_type = #tpu.core_type<tc>} {
    %c0 = arith.constant 0 : index
    %c0_0 = arith.constant 0 : index
    %0 = vector.load %arg0[%c0, %c0_0] : memref<16x64xf32, #tpu.memory_space<vmem>>, vector<16x32xf32>
    %c0_1 = arith.constant 0 : index
    %c32 = arith.constant 32 : index
    %1 = vector.load %arg0[%c0_1, %c32] : memref<16x64xf32, #tpu.memory_space<vmem>>, vector<16x32xf32>
    %c0_2 = arith.constant 0 : index
    %c0_3 = arith.constant 0 : index
    %2 = vector.load %arg4[%c0_2, %c0_3] : memref<64x176xf32, #tpu.memory_space<vmem>>, vector<64x32xf32>
    %c0_4 = arith.constant 0 : index
    %c32_5 = arith.constant 32 : index
    %3 = vector.load %arg4[%c0_4, %c32_5] : memref<64x176xf32, #tpu.memory_space<vmem>>, vector<64x32xf32>
    %c0_6 = arith.constant 0 : index
    %c64 = arith.constant 64 : index
    %4 = vector.load %arg4[%c0_6, %c64] : memref<64x176xf32, #tpu.memory_space<vmem>>, vector<64x16xf32>
    %c0_7 = arith.constant 0 : index
    %c80 = arith.constant 80 : index
    %5 = vector.load %arg4[%c0_7, %c80] : memref<64x176xf32, #tpu.memory_space<vmem>>, vector<64x64xf32>
    %c0_8 = arith.constant 0 : index
    %c144 = arith.constant 144 : index
    %6 = vector.load %arg4[%c0_8, %c144] : memref<64x176xf32, #tpu.memory_space<vmem>>, vector<64x32xf32>
    %c0_9 = arith.constant 0 : index
    %c0_10 = arith.constant 0 : index
    %7 = vector.load %arg2[%c0_9, %c0_10] : memref<16x128xf32, #tpu.memory_space<vmem>>, vector<1x96xf32>
    %c1 = arith.constant 1 : index
    %c0_11 = arith.constant 0 : index
    %8 = vector.load %arg2[%c1, %c0_11] : memref<16x128xf32, #tpu.memory_space<vmem>>, vector<1x32xf32>
    %c2 = arith.constant 2 : index
    %c0_12 = arith.constant 0 : index
    %9 = vector.load %arg2[%c2, %c0_12] : memref<16x128xf32, #tpu.memory_space<vmem>>, vector<1x32xf32>
    %c3 = arith.constant 3 : index
    %c0_13 = arith.constant 0 : index
    %10 = vector.load %arg2[%c3, %c0_13] : memref<16x128xf32, #tpu.memory_space<vmem>>, vector<1x64xf32>
    %c4 = arith.constant 4 : index
    %c0_14 = arith.constant 0 : index
    %11 = vector.load %arg2[%c4, %c0_14] : memref<16x128xf32, #tpu.memory_space<vmem>>, vector<1x32xf32>
    %c5 = arith.constant 5 : index
    %c0_15 = arith.constant 0 : index
    %12 = vector.load %arg2[%c5, %c0_15] : memref<16x128xf32, #tpu.memory_space<vmem>>, vector<1x64xf32>
    %c6 = arith.constant 6 : index
    %c0_16 = arith.constant 0 : index
    %13 = vector.load %arg2[%c6, %c0_16] : memref<16x128xf32, #tpu.memory_space<vmem>>, vector<1x32xf32>
    %c7 = arith.constant 7 : index
    %c0_17 = arith.constant 0 : index
    %14 = vector.load %arg2[%c7, %c0_17] : memref<16x128xf32, #tpu.memory_space<vmem>>, vector<1x32xf32>
    %c8 = arith.constant 8 : index
    %c0_18 = arith.constant 0 : index
    %15 = vector.load %arg2[%c8, %c0_18] : memref<16x128xf32, #tpu.memory_space<vmem>>, vector<1x32xf32>
    %c9 = arith.constant 9 : index
    %c0_19 = arith.constant 0 : index
    %16 = vector.load %arg2[%c9, %c0_19] : memref<16x128xf32, #tpu.memory_space<vmem>>, vector<1x32xf32>
    %c10 = arith.constant 10 : index
    %c0_20 = arith.constant 0 : index
    %17 = vector.load %arg2[%c10, %c0_20] : memref<16x128xf32, #tpu.memory_space<vmem>>, vector<1x32xf32>
    %c0_21 = arith.constant 0 : index
    %c0_22 = arith.constant 0 : index
    %18 = vector.load %arg3[%c0_21, %c0_22] : memref<32x320xf32, #tpu.memory_space<vmem>>, vector<32x96xf32>
    %cst = arith.constant dense<0.000000e+00> : vector<16x96xf32>
    %19 = tpu.matmul %0, %18, %cst {dimension_numbers = #tpu.dot_dimension_numbers<[1], [0], [0], [1], [0, 0, 1, 1], [], []>} : vector<16x32xf32>, vector<32x96xf32>, vector<16x96xf32> -> vector<16x96xf32>
    %20 = vector.broadcast %7 : vector<1x96xf32> to vector<16x96xf32>
    %21 = arith.addf %19, %20 : vector<16x96xf32>
    %22 = vector.extract_strided_slice %21 {offsets = [0, 0], sizes = [16, 32], strides = [1, 1]} : vector<16x96xf32> to vector<16x32xf32>
    %23 = vector.extract_strided_slice %21 {offsets = [0, 32], sizes = [16, 32], strides = [1, 1]} : vector<16x96xf32> to vector<16x32xf32>
    %24 = vector.extract_strided_slice %21 {offsets = [0, 64], sizes = [16, 32], strides = [1, 1]} : vector<16x96xf32> to vector<16x32xf32>
    %c0_23 = arith.constant 0 : index
    %c0_24 = arith.constant 0 : index
    %25 = vector.load %arg1[%c0_23, %c0_24] : memref<16x128xf32, #tpu.memory_space<vmem>>, vector<16x64xf32>
    %cst_25 = arith.constant dense<0.000000e+00> : vector<64x32xf32>
    %26 = tpu.matmul %4, %23, %cst_25 {dimension_numbers = #tpu.dot_dimension_numbers<[1], [0], [0], [1], [0, 0, 1, 1], [], []>} : vector<64x16xf32>, vector<16x32xf32>, vector<64x32xf32> -> vector<64x32xf32>
    %27 = arith.mulf %26, %3 : vector<64x32xf32>
    %cst_26 = arith.constant dense<0.000000e+00> : vector<64x32xf32>
    %28 = tpu.matmul %4, %24, %cst_26 {dimension_numbers = #tpu.dot_dimension_numbers<[1], [0], [0], [1], [0, 0, 1, 1], [], []>} : vector<64x16xf32>, vector<16x32xf32>, vector<64x32xf32> -> vector<64x32xf32>
    %29 = arith.mulf %28, %3 : vector<64x32xf32>
    %cst_27 = arith.constant dense<0.000000e+00> : vector<16x64xf32>
    %30 = tpu.matmul %22, %27, %cst_27 {dimension_numbers = #tpu.dot_dimension_numbers<[1], [1], [0], [0], [0, 0, 1, 0], [], []>} : vector<16x32xf32>, vector<64x32xf32>, vector<16x64xf32> -> vector<16x64xf32>
    %cst_28 = arith.constant 0.000000e+00 : f32
    %31 = vector.broadcast %cst_28 : f32 to vector<16x64xf32>
    %32 = arith.cmpf oeq, %25, %31 : vector<16x64xf32>
    %33 = arith.select %32, %30, %25 : vector<16x64xi1>, vector<16x64xf32>
    %cst_29 = arith.constant dense<0xFF800000> : vector<16xf32>
    %34 = vector.multi_reduction <maximumf>, %33, %cst_29 [1] : vector<16x64xf32> to vector<16xf32>
    %35 = vector.shape_cast %34 : vector<16xf32> to vector<16x1xf32>
    %36 = vector.broadcast %35 : vector<16x1xf32> to vector<16x64xf32>
    %37 = arith.subf %33, %36 : vector<16x64xf32>
    %38 = math.exp %37 : vector<16x64xf32>
    %cst_30 = arith.constant dense<0.000000e+00> : vector<16x64xf32>
    %39 = tpu.matmul %38, %5, %cst_30 {dimension_numbers = #tpu.dot_dimension_numbers<[1], [0], [0], [1], [0, 0, 1, 1], [], []>} : vector<16x64xf32>, vector<64x64xf32>, vector<16x64xf32> -> vector<16x64xf32>
    %40 = tpu.reciprocal %39 {approx = true} : vector<16x64xf32> -> vector<16x64xf32>
    %41 = arith.mulf %39, %40 : vector<16x64xf32>
    %cst_31 = arith.constant 2.000000e+00 : f32
    %42 = vector.broadcast %cst_31 : f32 to vector<16x64xf32>
    %43 = arith.subf %42, %41 : vector<16x64xf32>
    %44 = arith.mulf %40, %43 : vector<16x64xf32>
    %45 = arith.mulf %38, %44 : vector<16x64xf32>
    %cst_32 = arith.constant dense<0.000000e+00> : vector<16x32xf32>
    %46 = tpu.matmul %45, %29, %cst_32 {dimension_numbers = #tpu.dot_dimension_numbers<[1], [0], [0], [1], [0, 0, 1, 1], [], []>} : vector<16x64xf32>, vector<64x32xf32>, vector<16x32xf32> -> vector<16x32xf32>
    %c0_33 = arith.constant 0 : index
    %c96 = arith.constant 96 : index
    %47 = vector.load %arg3[%c0_33, %c96] : memref<32x320xf32, #tpu.memory_space<vmem>>, vector<32x32xf32>
    %cst_34 = arith.constant dense<0.000000e+00> : vector<16x32xf32>
    %48 = tpu.matmul %46, %47, %cst_34 {dimension_numbers = #tpu.dot_dimension_numbers<[1], [0], [0], [1], [0, 0, 1, 1], [], []>} : vector<16x32xf32>, vector<32x32xf32>, vector<16x32xf32> -> vector<16x32xf32>
    %49 = vector.broadcast %8 : vector<1x32xf32> to vector<16x32xf32>
    %50 = arith.addf %48, %49 : vector<16x32xf32>
    %51 = arith.addf %0, %50 : vector<16x32xf32>
    %cst_35 = arith.constant dense<0.000000e+00> : vector<16xf32>
    %52 = vector.multi_reduction <add>, %51, %cst_35 [1] : vector<16x32xf32> to vector<16xf32>
    %53 = vector.shape_cast %52 : vector<16xf32> to vector<16x1xf32>
    %cst_36 = arith.constant 3.200000e+01 : f32
    %54 = vector.broadcast %cst_36 : f32 to vector<16x1xf32>
    %55 = arith.divf %53, %54 : vector<16x1xf32>
    %56 = vector.broadcast %55 : vector<16x1xf32> to vector<16x32xf32>
    %57 = arith.subf %51, %56 : vector<16x32xf32>
    %58 = vector.broadcast %55 : vector<16x1xf32> to vector<16x32xf32>
    %59 = arith.subf %51, %58 : vector<16x32xf32>
    %60 = arith.mulf %57, %59 : vector<16x32xf32>
    %cst_37 = arith.constant dense<0.000000e+00> : vector<16xf32>
    %61 = vector.multi_reduction <add>, %60, %cst_37 [1] : vector<16x32xf32> to vector<16xf32>
    %62 = vector.shape_cast %61 : vector<16xf32> to vector<16x1xf32>
    %cst_38 = arith.constant 3.200000e+01 : f32
    %63 = vector.broadcast %cst_38 : f32 to vector<16x1xf32>
    %64 = arith.divf %62, %63 : vector<16x1xf32>
    %65 = vector.broadcast %55 : vector<16x1xf32> to vector<16x32xf32>
    %66 = arith.subf %51, %65 : vector<16x32xf32>
    %cst_39 = arith.constant 9.99999974E-6 : f32
    %67 = vector.broadcast %cst_39 : f32 to vector<16x1xf32>
    %68 = arith.addf %64, %67 : vector<16x1xf32>
    %69 = math.rsqrt %68 : vector<16x1xf32>
    %70 = vector.broadcast %69 : vector<16x1xf32> to vector<16x32xf32>
    %71 = arith.mulf %66, %70 : vector<16x32xf32>
    %72 = vector.broadcast %14 : vector<1x32xf32> to vector<16x32xf32>
    %73 = arith.mulf %71, %72 : vector<16x32xf32>
    %74 = vector.broadcast %15 : vector<1x32xf32> to vector<16x32xf32>
    %75 = arith.addf %73, %74 : vector<16x32xf32>
    %c0_40 = arith.constant 0 : index
    %c128 = arith.constant 128 : index
    %76 = vector.load %arg3[%c0_40, %c128] : memref<32x320xf32, #tpu.memory_space<vmem>>, vector<32x32xf32>
    %cst_41 = arith.constant dense<0.000000e+00> : vector<16x32xf32>
    %77 = tpu.matmul %75, %76, %cst_41 {dimension_numbers = #tpu.dot_dimension_numbers<[1], [0], [0], [1], [0, 0, 1, 1], [], []>} : vector<16x32xf32>, vector<32x32xf32>, vector<16x32xf32> -> vector<16x32xf32>
    %78 = vector.broadcast %9 : vector<1x32xf32> to vector<16x32xf32>
    %79 = arith.addf %77, %78 : vector<16x32xf32>
    %c0_42 = arith.constant 0 : index
    %c160 = arith.constant 160 : index
    %80 = vector.load %arg3[%c0_42, %c160] : memref<32x320xf32, #tpu.memory_space<vmem>>, vector<32x64xf32>
    %cst_43 = arith.constant dense<0.000000e+00> : vector<16x64xf32>
    %81 = tpu.matmul %1, %80, %cst_43 {dimension_numbers = #tpu.dot_dimension_numbers<[1], [0], [0], [1], [0, 0, 1, 1], [], []>} : vector<16x32xf32>, vector<32x64xf32>, vector<16x64xf32> -> vector<16x64xf32>
    %82 = vector.broadcast %10 : vector<1x64xf32> to vector<16x64xf32>
    %83 = arith.addf %81, %82 : vector<16x64xf32>
    %84 = vector.extract_strided_slice %83 {offsets = [0, 0], sizes = [16, 32], strides = [1, 1]} : vector<16x64xf32> to vector<16x32xf32>
    %85 = vector.extract_strided_slice %83 {offsets = [0, 32], sizes = [16, 32], strides = [1, 1]} : vector<16x64xf32> to vector<16x32xf32>
    %c0_44 = arith.constant 0 : index
    %c64_45 = arith.constant 64 : index
    %86 = vector.load %arg1[%c0_44, %c64_45] : memref<16x128xf32, #tpu.memory_space<vmem>>, vector<16x64xf32>
    %cst_46 = arith.constant dense<0.000000e+00> : vector<64x32xf32>
    %87 = tpu.matmul %4, %84, %cst_46 {dimension_numbers = #tpu.dot_dimension_numbers<[1], [0], [0], [1], [0, 0, 1, 1], [], []>} : vector<64x16xf32>, vector<16x32xf32>, vector<64x32xf32> -> vector<64x32xf32>
    %88 = arith.mulf %87, %3 : vector<64x32xf32>
    %cst_47 = arith.constant dense<0.000000e+00> : vector<64x32xf32>
    %89 = tpu.matmul %4, %85, %cst_47 {dimension_numbers = #tpu.dot_dimension_numbers<[1], [0], [0], [1], [0, 0, 1, 1], [], []>} : vector<64x16xf32>, vector<16x32xf32>, vector<64x32xf32> -> vector<64x32xf32>
    %90 = arith.mulf %89, %3 : vector<64x32xf32>
    %cst_48 = arith.constant dense<0.000000e+00> : vector<16x64xf32>
    %91 = tpu.matmul %79, %88, %cst_48 {dimension_numbers = #tpu.dot_dimension_numbers<[1], [1], [0], [0], [0, 0, 1, 0], [], []>} : vector<16x32xf32>, vector<64x32xf32>, vector<16x64xf32> -> vector<16x64xf32>
    %cst_49 = arith.constant 0.000000e+00 : f32
    %92 = vector.broadcast %cst_49 : f32 to vector<16x64xf32>
    %93 = arith.cmpf oeq, %86, %92 : vector<16x64xf32>
    %94 = arith.select %93, %91, %86 : vector<16x64xi1>, vector<16x64xf32>
    %cst_50 = arith.constant dense<0xFF800000> : vector<16xf32>
    %95 = vector.multi_reduction <maximumf>, %94, %cst_50 [1] : vector<16x64xf32> to vector<16xf32>
    %96 = vector.shape_cast %95 : vector<16xf32> to vector<16x1xf32>
    %97 = vector.broadcast %96 : vector<16x1xf32> to vector<16x64xf32>
    %98 = arith.subf %94, %97 : vector<16x64xf32>
    %99 = math.exp %98 : vector<16x64xf32>
    %cst_51 = arith.constant dense<0.000000e+00> : vector<16x64xf32>
    %100 = tpu.matmul %99, %5, %cst_51 {dimension_numbers = #tpu.dot_dimension_numbers<[1], [0], [0], [1], [0, 0, 1, 1], [], []>} : vector<16x64xf32>, vector<64x64xf32>, vector<16x64xf32> -> vector<16x64xf32>
    %101 = tpu.reciprocal %100 {approx = true} : vector<16x64xf32> -> vector<16x64xf32>
    %102 = arith.mulf %100, %101 : vector<16x64xf32>
    %cst_52 = arith.constant 2.000000e+00 : f32
    %103 = vector.broadcast %cst_52 : f32 to vector<16x64xf32>
    %104 = arith.subf %103, %102 : vector<16x64xf32>
    %105 = arith.mulf %101, %104 : vector<16x64xf32>
    %106 = arith.mulf %99, %105 : vector<16x64xf32>
    %cst_53 = arith.constant dense<0.000000e+00> : vector<16x32xf32>
    %107 = tpu.matmul %106, %90, %cst_53 {dimension_numbers = #tpu.dot_dimension_numbers<[1], [0], [0], [1], [0, 0, 1, 1], [], []>} : vector<16x64xf32>, vector<64x32xf32>, vector<16x32xf32> -> vector<16x32xf32>
    %c0_54 = arith.constant 0 : index
    %c224 = arith.constant 224 : index
    %108 = vector.load %arg3[%c0_54, %c224] : memref<32x320xf32, #tpu.memory_space<vmem>>, vector<32x32xf32>
    %cst_55 = arith.constant dense<0.000000e+00> : vector<16x32xf32>
    %109 = tpu.matmul %107, %108, %cst_55 {dimension_numbers = #tpu.dot_dimension_numbers<[1], [0], [0], [1], [0, 0, 1, 1], [], []>} : vector<16x32xf32>, vector<32x32xf32>, vector<16x32xf32> -> vector<16x32xf32>
    %110 = vector.broadcast %11 : vector<1x32xf32> to vector<16x32xf32>
    %111 = arith.addf %109, %110 : vector<16x32xf32>
    %112 = arith.addf %75, %111 : vector<16x32xf32>
    %cst_56 = arith.constant dense<0.000000e+00> : vector<16xf32>
    %113 = vector.multi_reduction <add>, %112, %cst_56 [1] : vector<16x32xf32> to vector<16xf32>
    %114 = vector.shape_cast %113 : vector<16xf32> to vector<16x1xf32>
    %cst_57 = arith.constant 3.200000e+01 : f32
    %115 = vector.broadcast %cst_57 : f32 to vector<16x1xf32>
    %116 = arith.divf %114, %115 : vector<16x1xf32>
    %117 = vector.broadcast %116 : vector<16x1xf32> to vector<16x32xf32>
    %118 = arith.subf %112, %117 : vector<16x32xf32>
    %119 = vector.broadcast %116 : vector<16x1xf32> to vector<16x32xf32>
    %120 = arith.subf %112, %119 : vector<16x32xf32>
    %121 = arith.mulf %118, %120 : vector<16x32xf32>
    %cst_58 = arith.constant dense<0.000000e+00> : vector<16xf32>
    %122 = vector.multi_reduction <add>, %121, %cst_58 [1] : vector<16x32xf32> to vector<16xf32>
    %123 = vector.shape_cast %122 : vector<16xf32> to vector<16x1xf32>
    %cst_59 = arith.constant 3.200000e+01 : f32
    %124 = vector.broadcast %cst_59 : f32 to vector<16x1xf32>
    %125 = arith.divf %123, %124 : vector<16x1xf32>
    %126 = vector.broadcast %116 : vector<16x1xf32> to vector<16x32xf32>
    %127 = arith.subf %112, %126 : vector<16x32xf32>
    %cst_60 = arith.constant 9.99999974E-6 : f32
    %128 = vector.broadcast %cst_60 : f32 to vector<16x1xf32>
    %129 = arith.addf %125, %128 : vector<16x1xf32>
    %130 = math.rsqrt %129 : vector<16x1xf32>
    %131 = vector.broadcast %130 : vector<16x1xf32> to vector<16x32xf32>
    %132 = arith.mulf %127, %131 : vector<16x32xf32>
    %133 = vector.broadcast %14 : vector<1x32xf32> to vector<16x32xf32>
    %134 = arith.mulf %132, %133 : vector<16x32xf32>
    %135 = vector.broadcast %15 : vector<1x32xf32> to vector<16x32xf32>
    %136 = arith.addf %134, %135 : vector<16x32xf32>
    %c0_61 = arith.constant 0 : index
    %c256 = arith.constant 256 : index
    %137 = vector.load %arg3[%c0_61, %c256] : memref<32x320xf32, #tpu.memory_space<vmem>>, vector<32x64xf32>
    %cst_62 = arith.constant dense<0.000000e+00> : vector<16x64xf32>
    %138 = tpu.matmul %136, %137, %cst_62 {dimension_numbers = #tpu.dot_dimension_numbers<[1], [0], [0], [1], [0, 0, 1, 1], [], []>} : vector<16x32xf32>, vector<32x64xf32>, vector<16x64xf32> -> vector<16x64xf32>
    %139 = vector.broadcast %12 : vector<1x64xf32> to vector<16x64xf32>
    %140 = arith.addf %138, %139 : vector<16x64xf32>
    %cst_63 = arith.constant 0.000000e+00 : f32
    %141 = vector.broadcast %cst_63 : f32 to vector<16x64xf32>
    %142 = arith.maximumf %140, %141 : vector<16x64xf32>
    %cst_64 = arith.constant dense<0.000000e+00> : vector<16x32xf32>
    %143 = tpu.matmul %142, %2, %cst_64 {dimension_numbers = #tpu.dot_dimension_numbers<[1], [0], [0], [1], [0, 0, 1, 1], [], []>} : vector<16x64xf32>, vector<64x32xf32>, vector<16x32xf32> -> vector<16x32xf32>
    %144 = vector.broadcast %13 : vector<1x32xf32> to vector<16x32xf32>
    %145 = arith.addf %143, %144 : vector<16x32xf32>
    %146 = arith.addf %136, %145 : vector<16x32xf32>
    %cst_65 = arith.constant dense<0.000000e+00> : vector<16xf32>
    %147 = vector.multi_reduction <add>, %146, %cst_65 [1] : vector<16x32xf32> to vector<16xf32>
    %148 = vector.shape_cast %147 : vector<16xf32> to vector<16x1xf32>
    %cst_66 = arith.constant 3.200000e+01 : f32
    %149 = vector.broadcast %cst_66 : f32 to vector<16x1xf32>
    %150 = arith.divf %148, %149 : vector<16x1xf32>
    %151 = vector.broadcast %150 : vector<16x1xf32> to vector<16x32xf32>
    %152 = arith.subf %146, %151 : vector<16x32xf32>
    %153 = vector.broadcast %150 : vector<16x1xf32> to vector<16x32xf32>
    %154 = arith.subf %146, %153 : vector<16x32xf32>
    %155 = arith.mulf %152, %154 : vector<16x32xf32>
    %cst_67 = arith.constant dense<0.000000e+00> : vector<16xf32>
    %156 = vector.multi_reduction <add>, %155, %cst_67 [1] : vector<16x32xf32> to vector<16xf32>
    %157 = vector.shape_cast %156 : vector<16xf32> to vector<16x1xf32>
    %cst_68 = arith.constant 3.200000e+01 : f32
    %158 = vector.broadcast %cst_68 : f32 to vector<16x1xf32>
    %159 = arith.divf %157, %158 : vector<16x1xf32>
    %160 = vector.broadcast %150 : vector<16x1xf32> to vector<16x32xf32>
    %161 = arith.subf %146, %160 : vector<16x32xf32>
    %cst_69 = arith.constant 9.99999974E-6 : f32
    %162 = vector.broadcast %cst_69 : f32 to vector<16x1xf32>
    %163 = arith.addf %159, %162 : vector<16x1xf32>
    %164 = math.rsqrt %163 : vector<16x1xf32>
    %165 = vector.broadcast %164 : vector<16x1xf32> to vector<16x32xf32>
    %166 = arith.mulf %161, %165 : vector<16x32xf32>
    %167 = vector.broadcast %16 : vector<1x32xf32> to vector<16x32xf32>
    %168 = arith.mulf %166, %167 : vector<16x32xf32>
    %169 = vector.broadcast %17 : vector<1x32xf32> to vector<16x32xf32>
    %170 = arith.addf %168, %169 : vector<16x32xf32>
    %cst_70 = arith.constant dense<0.000000e+00> : vector<16x32xf32>
    %171 = tpu.matmul %106, %6, %cst_70 {dimension_numbers = #tpu.dot_dimension_numbers<[1], [0], [0], [1], [0, 0, 1, 1], [], []>} : vector<16x64xf32>, vector<64x32xf32>, vector<16x32xf32> -> vector<16x32xf32>
    %cst_71 = arith.constant 0.000000e+00 : f32
    %172 = vector.broadcast %cst_71 : f32 to vector<16x64xf32>
    %173 = tpu.concatenate %170, %171, %172 in 1 : vector<16x32xf32>, vector<16x32xf32>, vector<16x64xf32> -> vector<16x128xf32>
    %c0_72 = arith.constant 0 : index
    %c0_73 = arith.constant 0 : index
    %174 = vector.load %arg5[%c0_72, %c0_73] : memref<16x128xf32, #tpu.memory_space<vmem>>, vector<16x128xf32>
    tpu.vector_store %arg5[%c0_72, %c0_73], %173 {strides = array<i32>} : memref<16x128xf32, #tpu.memory_space<vmem>>, vector<16x128xf32>,
    return
  }
}

</mosaic_0001>

<bundles_post_ra>
// kernel: decoder_layer.1
= control target key start
LH: loop header
LB: loop body
LE: loop exit
PB: predicated region body
PF: predicated region fallthrough
CT: control target
= control target key end

     0   :  { %10 = vsyncpa [#allocation3], 0  ;;  %s3714_s0 = inlined_call_operand.vmem [shape: f32[16,64], index: 0, kind: input, shape index: {}]   ;;  %s3715_s1 = inlined_call_operand.vmem [shape: f32[16,128], index: 1, kind: input, shape index: {}]   ;;  %s3716_s2 = inlined_call_operand.vmem [shape: f32[16,128], index: 2, kind: input, shape index: {}]   ;;  %s3717_s3 = inlined_call_operand.hbm [shape: f32[32,320], index: 3, kind: input, shape index: {}]   ;;  %s3718_s4 = inlined_call_operand.hbm [shape: f32[64,176], index: 4, kind: input, shape index: {}]   ;;  %s3719_s5 = inlined_call_operand.vmem [shape: f32[16,128], index: 5, kind: output, shape index: {}]  }
   0x1   :  { %11 = vsyncpa [#allocation5], 0  ;;  %s3105_s18 = smov [#allocation2]   ;;  %s3057_s22 = scalar_lea.hbm %s3717_s3, 1536 }
   0x2   :  { %s23_s19 = sshll.u32 %s3105_s18, 4  ;;  %p3058_p0 = scmp.ne.s32.totalorder %s3717_s3, %s3057_s22  ;;  %s24_s19 = int_to_ptr.vmem [resolvable:$true] %s23_s19 }
   0x3   :  { %p3061_p1 = scmp.lt.u32.totalorder %s3057_s22, %s3717_s3 }
   0x5   :  { %p3063_p2 = pnand %p3061_p1, %p3058_p0 }
   0x7   :  { %3066 = shalt.err (!%p3063_p2)
}
   0x8   :  { %s3067_s27 = scalar_lea.vmem %s24_s19, 1536  ;;  %p3072_p4 = scmp.lt.s32.totalorder %s24_s19, %s24_s19 }
   0x9   :  { %p3068_p3 = scmp.ne.s32.totalorder %s24_s19, %s3067_s27  ;;  %p3073_p5 = scmp.lt.s32.totalorder %s3067_s27, %s3067_s27 }
   0xb   :  { %p3074_p6 = por %p3073_p5, %p3072_p4 }
   0xd   :  { %p3075_p7 = pnand %p3074_p6, %p3068_p3 }
   0xf   :  { %3078 = shalt.err (!%p3075_p7)
}
  0x10   :  { %s3106_s28 = smov 384   ;;  %s3107_s29 = smov 24  }
  0x11   :  { %29 = dma.hbm_to_vmem [thread:$0]  %s3717_s3, 1536, %s24_s19, [#allocation3], %s3106_s28, %s3106_s28, %s3107_s29  }
  0x12   :  { %s3108_s7 = smov [#allocation4]   ;;  %s3079_s11 = scalar_lea.hbm %s3718_s4, 2048 }
  0x13   :  { %s35_s8 = sshll.u32 %s3108_s7, 4  ;;  %p3080_p8 = scmp.ne.s32.totalorder %s3718_s4, %s3079_s11  ;;  %s36_s8 = int_to_ptr.vmem [resolvable:$true] %s35_s8 }
  0x14   :  { %p3083_p9 = scmp.lt.u32.totalorder %s3079_s11, %s3718_s4 }
  0x16   :  { %p3085_p10 = pnand %p3083_p9, %p3080_p8 }
  0x18   :  { %3088 = shalt.err (!%p3085_p10)
}
  0x19   :  { %s3089_s16 = scalar_lea.vmem %s36_s8, 2048  ;;  %p3094_p12 = scmp.lt.s32.totalorder %s36_s8, %s36_s8 }
  0x1a   :  { %p3090_p11 = scmp.ne.s32.totalorder %s36_s8, %s3089_s16  ;;  %p3095_p13 = scmp.lt.s32.totalorder %s3089_s16, %s3089_s16 }
  0x1c   :  { %p3096_p0 = por %p3095_p13, %p3094_p12 }
  0x1e   :  { %p3097_p1 = pnand %p3096_p0, %p3090_p11 }
  0x20   :  { %3100 = shalt.err (!%p3097_p1)
}
  0x21   :  { %s3109_s3 = smov 256   ;;  %s3110_s17 = smov 16  }
  0x22   :  { %41 = dma.hbm_to_vmem [thread:$0]  %s3718_s4, 2048, %s36_s8, [#allocation5], %s3109_s3, %s3109_s3, %s3110_s17  }
  0x23   :  { %3101 = dma.done.wait [#allocation3], 1536  }
  0x24   :  { %3102 = vsyncadd [#allocation3], 4294965760 }
  0x25   :  { %3103 = dma.done.wait [#allocation5], 2048  }
  0x26   :  { %3104 = vsyncadd [#allocation5], 4294965248  ;;  %vm85_vm0 = vcmask 261120   ;;  %v3170_v0 = vld [vmem:[#allocation2] sm:$0xff]  ;;  %v3172_v1 = vld [vmem:[#allocation2 + $0x18] sm:$0xff]  ;;  %s3111_s23 = smov 64  }
  0x27   :  { %v3174_v2 = vld [vmem:[#allocation2 + $0x30] sm:$0xff]  ;;  %v2965_v3 = vpack.i.bf16 %v3172_v1, %v3170_v0  ;;  %v2696_v4 = vpack.c.bf16 %v3172_v1, %v3170_v0  ;;  %v3180_v5 = vld [vmem:[#allocation2 + $0x48] sm:$0xff]  ;;  %v3185_v6 = vld [vmem:[%s3714_s0] sm:$0xff]  ;;  %s3113_s26 = smov 48   ;;  %vm201_vm1 = vcmask 130048   ;;  %vm634_vm3 = vcmask 392192  }
  0x28   :  { %v2700_v7 = vpack.c.bf16 %v3180_v5, %v3174_v2  ;;  %2422 = vmatprep.mubr.msk.f32.mxu0 %vm85_vm0, %v3185_v6  ;;  %v3194_v8 = vld [vmem:[%s3714_s0 + $0x8] sm:$0xff]  ;;  %v3198_v9 = vld [vmem:[#allocation4 + $0x10] sm:$0xff]  ;;  %v52_v10 = vld [vmem:[#allocation4 + $0x20] sm:$0xff]  ;;  %s3112_s0 = smov 96   ;;  %vm581_vm5 = vcmask 523264   ;;  %vm1506_vm7 = vcmask 1048064  }
  0x29   :  { %2697 = vmatprep.subr.bf16.mxu0 %v2696_v4  ;;  %179 = vrot.lane.b32.xlu1 %v3198_v9, %s3111_s23  ;;  %v54_v11 = vld [vmem:[#allocation4 + $0x40] sm:$0xff]  ;;  %v3225_v20 = vld [vmem:[#allocation4 + $0x30] sm:$0xff]  ;;  %v60_v23 = vld [vmem:[#allocation4 + $0x28] sm:$0xff]  ;;  %s3115_s17 = smov 112  }
  0x2a   :  { %2699 = vmatpush3.bf16.msra.mxu0 %v2696_v4  ;;  %v3204_v12 = vld [vmem:[#allocation4 + $0x60] sm:$0xff]  ;;  %v3229_v21 = vld [vmem:[#allocation4 + $0x50] sm:$0xff]  ;;  %v2930_v24 = vpack.i.bf16 %v60_v23, %v52_v10  ;;  %v3245_v25 = vld [vmem:[#allocation4 + $0x48] sm:$0xff] }
  0x2b   :  { %2701 = vmatprep.subr.bf16.mxu0 %v2700_v7  ;;  %v3208_v13 = vld [vmem:[#allocation4] sm:$0xff]  ;;  %v3233_v22 = vld [vmem:[#allocation4 + $0x70] sm:$0xff]  ;;  %v2940_v26 = vpack.i.bf16 %v3245_v25, %v54_v11  ;;  %v3312_v49 = vld [vmem:[#allocation4 + $0x8] sm:$0xff] }
  0x2c   :  { %v2171_v14 = vld [vmem:[%s3716_s2] ss:$0 sm:$0xff]  ;;  %v3314_v50 = vld [vmem:[#allocation4 + $0x18] sm:$0xff]  ;;  %v2920_v51 = vpack.i.bf16 %v3312_v49, %v3208_v13  ;;  %vm3338_vm2 = vmpackc.low %vm85_vm0, %vm85_vm0 }
  0x2d   :  { %181 = vrot.lane.b32.xlu1 %v52_v10, %s3111_s23  ;;  %v2925_v52 = vpack.i.bf16 %v3314_v50, %v3198_v9  ;;  %v3321_v53 = vld [vmem:[#allocation4 + $0x38] sm:$0xff] }
  0x2e   :  { %2703 = vmatpush3.bf16.msra.mxu0 %v2700_v7  ;;  %v2935_v54 = vpack.i.bf16 %v3321_v53, %v3225_v20  ;;  %v3326_v55 = vld [vmem:[#allocation4 + $0x58] sm:$0xff] }
  0x2f   :  { %v2945_v56 = vpack.i.bf16 %v3326_v55, %v3229_v21 }
  0x31   :  { %2423 = vmatmul.mubr.msk.f32.vlgmr.msra.gmra.mrb[0].mxu0 %vm85_vm0, %v3194_v8  ;;  %185 = vrot.lane.b32.xlu1 %v54_v11, %s3111_s23 }
  0x35   :  { %189 = vrot.lane.b32.xlu1 %v3204_v12, %s3111_s23 }
  0x39   :  { %323 = vrot.lane.b32.xlu1 %v3208_v13, %s3112_s0 }
  0x3d   :  { %327 = vrot.lane.b32.xlu1 %v52_v10, %s3112_s0 }
  0x41   :  { %331 = vrot.lane.b32.xlu1 %v54_v11, %s3112_s0 }
  0x45   :  { %335 = vrot.lane.b32.xlu1 %v3204_v12, %s3112_s0 }
  0x49   :  { %2921 = vrot.lane.b32.xlu1 %v2920_v51, %s3113_s26 }
  0x4d   :  { %2926 = vrot.lane.b32.xlu1 %v2925_v52, %s3113_s26 }
  0x51   :  { %2936 = vrot.lane.b32.xlu1 %v2935_v54, %s3113_s26 }
  0x55   :  { %2946 = vrot.lane.b32.xlu1 %v2945_v56, %s3113_s26 }
  0x9b   :  { %v3251_v27 = vpop.permute.xlu1 %179 }
  0x9f   :  { %v3253_v32 = vpop.permute.xlu1 %181 }
  0xa3   :  { %v3265_v35 = vpop.permute.xlu1 %185 }
  0xa7   :  { %v3275_v37 = vpop.permute.xlu1 %189 }
  0xab   :  { %v3332_v57 = vpop.permute.xlu1 %323 }
  0xaf   :  { %v3342_v63 = vpop.permute.xlu1 %327 }
 0x104   :  { %v2424_v15 = vpop.f32.mrb[0].mxu0 }
 0x105   :  { %v3219_v16 = vadd.f32 %v2424_v15, %v2171_v14  ;;  %v158_v17 = vpop.f32.mrb[1].mxu0 }
 0x106   :  { %v159_v18 = vadd.f32 %v2171_v14, %v158_v17 }
 0x108   :  { %v2915_v19 = vpack.i.bf16 %v3219_v16, %v159_v18 }
 0x10a   :  { %2916 = vrot.lane.b32.xlu0 %v2915_v19, %s3112_s0 }
 0x10e   :  { %177 = vrot.lane.b32.xlu0 %v3208_v13, %s3111_s23  ;;  %v3350_v13 = vpop.permute.xlu1 %331 }
 0x112   :  { %183 = vrot.lane.b32.xlu0 %v3225_v20, %s3111_s23 }
 0x116   :  { %187 = vrot.lane.b32.xlu0 %v3229_v21, %s3111_s23 }
 0x11a   :  { %191 = vrot.lane.b32.xlu0 %v3233_v22, %s3111_s23 }
 0x11e   :  { %325 = vrot.lane.b32.xlu0 %v3198_v9, %s3112_s0 }
 0x122   :  { %329 = vrot.lane.b32.xlu0 %v3225_v20, %s3112_s0  ;;  %v3356_v20 = vpop.permute.xlu1 %335 }
 0x126   :  { %333 = vrot.lane.b32.xlu0 %v3229_v21, %s3112_s0 }
 0x12a   :  { %337 = vrot.lane.b32.xlu0 %v3233_v22, %s3112_s0 }
 0x12e   :  { %2931 = vrot.lane.b32.xlu0 %v2930_v24, %s3113_s26 }
 0x132   :  { %2941 = vrot.lane.b32.xlu0 %v2940_v26, %s3113_s26 }
 0x136   :  { %2951 = vrot.lane.b32.xlu0 %v2915_v19, %s3111_s23 }
 0x17c   :  { %v2917_v28 = vpop.permute.xlu0 %2916 }
 0x17d   :  { %v2919_v29 = vunpack.i.h.bf16 %v2917_v28  ;;  %v2918_v30 = vunpack.i.l.bf16 %v2917_v28 }
 0x17f   :  { %v2704_v31 = vpack.c.bf16 %v2919_v29, %v2918_v30 }
 0x180   :  { %v3255_v33 = vpop.permute.xlu0 %177 }
 0x181   :  { %2705 = vmatprep.subr.bf16.mxu1 %v2704_v31  ;;  %2429 = vmatprep.mubr.msk.f32.mxu1 %vm201_vm1, %v3255_v33 }
 0x182   :  { %2707 = vmatpush3.bf16.msra.mxu1 %v2704_v31  ;;  %2445 = vmatprep.mubr.msk.f32.mxu0 %vm201_vm1, %v3255_v33 }
 0x184   :  { %v3261_v34 = vpop.permute.xlu0 %183 }
 0x185   :  { %2430 = vmatmul.mubr.msk.f32.vlgmr.msra.gmra.mrb[0].mxu1 %vm201_vm1, %v3251_v27 }
 0x186   :  { %2432 = vmatprep.mubr.msk.f32.mxu1 %vm201_vm1, %v3253_v32 }
 0x188   :  { %v3269_v36 = vpop.permute.xlu0 %187 }
 0x189   :  { %2433 = vmatmul.mubr.msk.f32.gmra.mrb[2].mxu1 %vm201_vm1, %v3261_v34 }
 0x18a   :  { %2435 = vmatprep.mubr.msk.f32.mxu1 %vm201_vm1, %v3265_v35 }
 0x18c   :  { %v3277_v38 = vpop.permute.xlu0 %191 }
 0x18d   :  { %2436 = vmatmul.mubr.msk.f32.gmra.mrb[4].mxu1 %vm201_vm1, %v3269_v36 }
 0x18e   :  { %2438 = vmatprep.mubr.msk.f32.mxu1 %vm201_vm1, %v3275_v37 }
 0x190   :  { %v3283_v39 = vpop.permute.xlu0 %325 }
 0x191   :  { %2439 = vmatmul.mubr.msk.f32.gmra.mrb[6].mxu1 %vm201_vm1, %v3277_v38 }
 0x192   :  { %2473 = vmatprep.mubr.msk.f32.mxu1 %vm85_vm0, %v159_v18 }
 0x194   :  { %v3288_v40 = vpop.permute.xlu0 %329 }
 0x198   :  { %v3290_v41 = vpop.permute.xlu0 %333 }
 0x19c   :  { %v3292_v42 = vpop.permute.xlu0 %337 }
 0x1a0   :  { %v3294_v43 = vpop.permute.xlu0 %2931 }
 0x1a4   :  { %v3296_v44 = vpop.permute.xlu0 %2941 }
 0x1a8   :  { %v2952_v45 = vpop.permute.xlu0 %2951 }
 0x1a9   :  { %v2954_v46 = vunpack.i.h.bf16 %v2952_v45  ;;  %v2953_v47 = vunpack.i.l.bf16 %v2952_v45 }
 0x1ab   :  { %v2708_v48 = vpack.c.bf16 %v2954_v46, %v2953_v47 }
 0x1ad   :  { %2709 = vmatprep.subr.bf16.mxu0 %v2708_v48 }
 0x1ae   :  { %2711 = vmatpush3.bf16.msra.mxu0 %v2708_v48 }
 0x1b1   :  { %2446 = vmatmul.mubr.msk.f32.vlgmr.msra.gmra.mrb[2].mxu0 %vm201_vm1, %v3251_v27 }
 0x1b2   :  { %2448 = vmatprep.mubr.msk.f32.mxu0 %vm201_vm1, %v3253_v32 }
 0x1b5   :  { %2449 = vmatmul.mubr.msk.f32.gmra.mrb[4].mxu0 %vm201_vm1, %v3261_v34 }
 0x1b6   :  { %2451 = vmatprep.mubr.msk.f32.mxu0 %vm201_vm1, %v3265_v35 }
 0x1b9   :  { %2452 = vmatmul.mubr.msk.f32.gmra.mrb[6].mxu0 %vm201_vm1, %v3269_v36 }
 0x1ba   :  { %2454 = vmatprep.mubr.msk.f32.mxu0 %vm201_vm1, %v3275_v37 }
 0x1bd   :  { %2455 = vmatmul.mubr.msk.f32.gmra.mrb[8].mxu0 %vm201_vm1, %v3277_v38 }
 0x258   :  { %v2431_v58 = vpop.f32.mrb[0].mxu1 }
 0x259   :  { %v348_v59 = vmul.f32 %v2431_v58, %v3283_v39  ;;  %v284_v60 = vpop.f32.mrb[1].mxu1 }
 0x25a   :  { %v347_v61 = vmul.f32 %v3332_v57, %v284_v60 }
 0x25c   :  { %v2712_v4 = vpack.c.bf16 %v348_v59, %v347_v61  ;;  %v2434_v7 = vpop.f32.mrb[2].mxu1 }
 0x25d   :  { %v350_v9 = vmul.f32 %v2434_v7, %v3288_v40  ;;  %v294_v10 = vpop.f32.mrb[3].mxu1 }
 0x25e   :  { %2714 = vmatprep.subr.msk.bf16.mxu1 %vm3338_vm2, %v2712_v4  ;;  %v349_v11 = vmul.f32 %v3342_v63, %v294_v10 }
 0x25f   :  { %2717 = vmatpush3.bf16.xpose.msk.msra.mxu1 %vm3338_vm2, %v2712_v4 }
 0x260   :  { %v2718_v14 = vpack.c.bf16 %v350_v9, %v349_v11  ;;  %v2437_v15 = vpop.f32.mrb[4].mxu1 }
 0x261   :  { %v352_v17 = vmul.f32 %v2437_v15, %v3290_v41  ;;  %v304_v18 = vpop.f32.mrb[5].mxu1 }
 0x262   :  { %2720 = vmatprep.subr.msk.bf16.mxu1 %vm3338_vm2, %v2718_v14  ;;  %v351_v19 = vmul.f32 %v3350_v13, %v304_v18  ;;  %v2934_v18 = vunpack.i.h.bf16 %v3294_v43 }
 0x264   :  { %v2724_v21 = vpack.c.bf16 %v352_v17, %v351_v19  ;;  %v2440_v23 = vpop.f32.mrb[6].mxu1  ;;  %v2933_v19 = vunpack.i.l.bf16 %v3294_v43 }
 0x265   :  { %v354_v24 = vmul.f32 %v2440_v23, %v3292_v42  ;;  %v314_v26 = vpop.f32.mrb[7].mxu1 }
 0x266   :  { %v353_v28 = vmul.f32 %v3356_v20, %v314_v26 }
 0x267   :  { %2723 = vmatpush3.bf16.xpose.msk.msra.mxu1 %vm3338_vm2, %v2718_v14  ;;  %v2922_v14 = vpop.permute.xlu1 %2921 }
 0x268   :  { %2726 = vmatprep.subr.msk.bf16.mxu1 %vm3338_vm2, %v2724_v21  ;;  %v2730_v29 = vpack.c.bf16 %v354_v24, %v353_v28  ;;  %v2924_v15 = vunpack.i.h.bf16 %v2922_v14  ;;  %v2923_v17 = vunpack.i.l.bf16 %v2922_v14 }
 0x26a   :  { %v635_v23 = vsel %vm634_vm3, %v2923_v17, %v2924_v15 }
 0x26f   :  { %2729 = vmatpush3.bf16.xpose.msk.msra.mxu1 %vm3338_vm2, %v2724_v21  ;;  %v2927_v21 = vpop.permute.xlu1 %2926 }
 0x270   :  { %2732 = vmatprep.subr.msk.bf16.mxu1 %vm3338_vm2, %v2730_v29  ;;  %v2929_v24 = vunpack.i.h.bf16 %v2927_v21  ;;  %v2928_v26 = vunpack.i.l.bf16 %v2927_v21 }
 0x272   :  { %v636_v28 = vsel %vm634_vm3, %v2928_v26, %v2929_v24 }
 0x277   :  { %2735 = vmatpush3.bf16.xpose.msk.msra.mxu1 %vm3338_vm2, %v2730_v29  ;;  %v637_v29 = vsel %vm634_vm3, %v2933_v19, %v2934_v18  ;;  %v3430_v19 = vld [vmem:[#allocation4 + $0x78] sm:$0xff] }
 0x278   :  { %v2960_v21 = vpack.i.bf16 %v3430_v19, %v3233_v22 }
 0x27e   :  { %2474 = vmatmul.mubr.msk.f32.vlgmr.msra.gmra.mrb[8].mxu1 %vm85_vm0, %v3219_v16 }
 0x284   :  { %v2447_v30 = vpop.f32.mrb[2].mxu0 }
 0x285   :  { %v467_v31 = vmul.f32 %v2447_v30, %v3283_v39  ;;  %v427_v45 = vpop.f32.mrb[3].mxu0  ;;  %v3393_v30 = vpack.c.bf16 %v636_v28, %v635_v23  ;;  %v3434_v23 = vld [vmem:[#allocation4 + $0x68] sm:$0xff] }
 0x286   :  { %v466_v46 = vmul.f32 %v427_v45, %v3332_v57  ;;  %v2944_v45 = vunpack.i.h.bf16 %v3296_v44  ;;  %v2955_v24 = vpack.i.bf16 %v3434_v23, %v3204_v12 }
 0x287   :  { %2737 = vmatprep.subr.bf16.mxu0 %v3393_v30 }
 0x288   :  { %v3374_v47 = vpack.c.bf16 %v467_v31, %v466_v46  ;;  %v2450_v48 = vpop.f32.mrb[4].mxu0  ;;  %v2937_v31 = vpop.permute.xlu1 %2936  ;;  %v2943_v46 = vunpack.i.l.bf16 %v3296_v44  ;;  %2739 = vmatpush3.bf16.msra.mxu0 %v3393_v30 }
 0x289   :  { %v469_v51 = vmul.f32 %v2450_v48, %v3288_v40  ;;  %v437_v52 = vpop.f32.mrb[5].mxu0  ;;  %v2939_v48 = vunpack.i.h.bf16 %v2937_v31 }
 0x28a   :  { %v468_v54 = vmul.f32 %v437_v52, %v3342_v63 }
 0x28c   :  { %v3378_v56 = vpack.c.bf16 %v469_v51, %v468_v54  ;;  %v2453_v58 = vpop.f32.mrb[6].mxu0  ;;  %v2938_v51 = vunpack.i.l.bf16 %v2937_v31  ;;  %v2947_v54 = vpop.permute.xlu1 %2946 }
 0x28d   :  { %v471_v59 = vmul.f32 %v2453_v58, %v3290_v41  ;;  %v447_v16 = vpop.f32.mrb[7].mxu0  ;;  %v639_v58 = vsel %vm634_vm3, %v2943_v46, %v2944_v45 }
 0x28e   :  { %v470_v60 = vmul.f32 %v447_v16, %v3350_v13  ;;  %v638_v43 = vsel %vm634_vm3, %v2938_v51, %v2939_v48  ;;  %v2948_v16 = vunpack.i.l.bf16 %v2947_v54 }
 0x28f   :  { %v3400_v52 = vpack.c.bf16 %v638_v43, %v637_v29 }
 0x290   :  { %v3382_v61 = vpack.c.bf16 %v471_v59, %v470_v60  ;;  %v2456_v4 = vpop.f32.mrb[8].mxu0  ;;  %v2949_v59 = vunpack.i.h.bf16 %v2947_v54 }
 0x291   :  { %v473_v7 = vmul.f32 %v2456_v4, %v3292_v42  ;;  %v457_v9 = vpop.f32.mrb[9].mxu0  ;;  %2741 = vmatprep.subr.bf16.mxu0 %v3400_v52  ;;  %v3413_v4 = vld [vmem:[%s3715_s1 + $0x8] sm:$0xff] }
 0x292   :  { %v472_v10 = vmul.f32 %v457_v9, %v3356_v20  ;;  %v640_v60 = vsel %vm634_vm3, %v2948_v16, %v2949_v59  ;;  %2743 = vmatpush3.bf16.msra.mxu0 %v3400_v52  ;;  %vm578_vm4 = vcmp.eq.f32.partialorder %v3413_v4, 0.0 }
 0x293   :  { %v3406_v44 = vpack.c.bf16 %v640_v60, %v639_v58 }
 0x294   :  { %v3386_v11 = vpack.c.bf16 %v473_v7, %v472_v10  ;;  %v3418_v7 = vld [vmem:[%s3715_s1] sm:$0xff]  ;;  %s3114_s1 = smov 32  }
 0x295   :  { %2745 = vmatprep.subr.bf16.mxu0 %v3406_v44  ;;  %vm577_vm6 = vcmp.eq.f32.partialorder %v3418_v7, 0.0 }
 0x296   :  { %2747 = vmatpush3.bf16.msra.mxu0 %v3406_v44 }
 0x351   :  { %v2475_v9 = vpop.f32.mrb[8].mxu1 }
 0x352   :  { %v568_v10 = vpop.f32.mrb[9].mxu1  ;;  %v580_v14 = vsel %vm578_vm4, %v2475_v9, %v3413_v4 }
 0x353   :  { %v585_v15 = vsel %vm581_vm5, %v580_v14, -inf  ;;  %v579_v17 = vsel %vm577_vm6, %v568_v10, %v3418_v7  ;;  %v2970_v10 = vpack.i.bf16 %v3180_v5, %v3174_v2 }
 0x354   :  { %586 = vmax.xlane.f32.xlu0 %v585_v15  ;;  %v582_v18 = vsel %vm581_vm5, %v579_v17, -inf  ;;  %v3460_v15 = vld [vmem:[#allocation2 + $0x20] sm:$0xff] }
 0x355   :  { %583 = vmax.xlane.f32.xlu1 %v582_v18 }
 0x366   :  { %2961 = vrot.lane.b32.xlu1 %v2960_v21, %s3113_s26 }
 0x36a   :  { %2956 = vrot.lane.b32.xlu0 %v2955_v24, %s3113_s26  ;;  %2971 = vrot.lane.b32.xlu1 %v2970_v10, %s3114_s1 }
 0x36e   :  { %2966 = vrot.lane.b32.xlu0 %v2965_v3, %s3114_s1 }
 0x3e1   :  { %v587_v26 = vpop.xlane.xlu0 %586 }
 0x3e2   :  { %v589_v28 = vsub.f32 %v580_v14, %v587_v26  ;;  %v584_v29 = vpop.xlane.xlu1 %583  ;;  %v3458_v14 = vld [vmem:[#allocation2 + $0x8] sm:$0xff] }
 0x3e3   :  { %v588_v31 = vsub.f32 %v579_v17, %v584_v29 }
 0x3e4   :  { %v592_v45 = vmul.f32 1.442695, %v589_v28 }
 0x3e5   :  { %v590_v46 = vmul.f32 1.442695, %v588_v31  ;;  %v2957_v48 = vpop.permute.xlu0 %2956 }
 0x3e6   :  { %v2959_v51 = vunpack.i.h.bf16 %v2957_v48  ;;  %v2958_v43 = vunpack.i.l.bf16 %v2957_v48  ;;  %v2962_v54 = vpop.permute.xlu1 %2961 }
 0x3e7   :  { %3020 = vpow2.f32 %v590_v46  ;;  %v2964_v22 = vunpack.i.h.bf16 %v2962_v54  ;;  %v2963_v58 = vunpack.i.l.bf16 %v2962_v54 }
 0x3e8   :  { %3022 = vpow2.f32 %v592_v45  ;;  %v641_v12 = vsel %vm634_vm3, %v2958_v43, %v2959_v51 }
 0x3e9   :  { %v642_v59 = vsel %vm634_vm3, %v2963_v58, %v2964_v22  ;;  %v2967_v3 = vpop.permute.xlu0 %2966 }
 0x3ea   :  { %v3442_v16 = vpack.c.bf16 %v642_v59, %v641_v12  ;;  %v2969_v5 = vunpack.i.h.bf16 %v2967_v3  ;;  %v2972_v17 = vpop.permute.xlu1 %2971 }
 0x3eb   :  { %v2974_v21 = vunpack.i.h.bf16 %v2972_v17  ;;  %v2973_v24 = vunpack.i.l.bf16 %v2972_v17 }
 0x3ec   :  { %2749 = vmatprep.subr.bf16.mxu0 %v3442_v16 }
 0x3ed   :  { %2751 = vmatpush3.bf16.msra.mxu0 %v3442_v16  ;;  %v2772_v45 = vpack.c.bf16 %v2974_v21, %v2973_v24 }
 0x3ee   :  { %2753 = vmatprep.subr.bf16.mxu0 %v3374_v47 }
 0x3f1   :  { %v3021_v60 = vpop.eup %3020 }
 0x3f2   :  { %v3023_v9 = vpop.eup %3022  ;;  %2492 = vmatprep.mubr.msk.f32.mxu0 %vm581_vm5, %v3021_v60 }
 0x3f3   :  { %2493 = vmatmul.mubr.msk.f32.vlgmr.msra.gmra.mrb[10].mxu0 %vm581_vm5, %v3023_v9 }
 0x3f4   :  { %2755 = vmatpush3.bf16.msra.mxu0 %v3374_v47  ;;  %v3462_v47 = vld [vmem:[#allocation2 + $0x38] sm:$0xff] }
 0x3f5   :  { %2757 = vmatprep.subr.bf16.mxu0 %v3378_v56 }
 0x3f8   :  { %2759 = vmatpush3.bf16.msra.mxu0 %v3378_v56  ;;  %v3470_v56 = vpack.i.bf16 %v3460_v15, %v3458_v14 }
 0x3f9   :  { %2761 = vmatprep.subr.bf16.mxu0 %v3382_v61 }
 0x3fa   :  { %2976 = vrot.lane.b32.xlu0 %v3470_v56, %s3112_s0 }
 0x3fc   :  { %2763 = vmatpush3.bf16.msra.mxu0 %v3382_v61  ;;  %v3472_v61 = vld [vmem:[#allocation2 + $0x50] sm:$0xff] }
 0x3fd   :  { %2765 = vmatprep.subr.bf16.mxu0 %v3386_v11  ;;  %v3477_v2 = vpack.i.bf16 %v3472_v61, %v3462_v47 }
 0x3fe   :  { %1058 = vrot.lane.b32.xlu0 %v3185_v6, %s3112_s0 }
 0x3ff   :  { %2981 = vrot.lane.b32.xlu1 %v3477_v2, %s3112_s0 }
 0x400   :  { %2767 = vmatpush3.bf16.msra.mxu0 %v3386_v11  ;;  %v2968_v11 = vunpack.i.l.bf16 %v2967_v3 }
 0x402   :  { %v2768_v29 = vpack.c.bf16 %v2969_v5, %v2968_v11 }
 0x403   :  { %1060 = vrot.lane.b32.xlu1 %v3194_v8, %s3112_s0 }
 0x404   :  { %2769 = vmatprep.subr.bf16.mxu1 %v2768_v29 }
 0x405   :  { %2771 = vmatpush3.bf16.msra.mxu1 %v2768_v29 }
 0x406   :  { %2773 = vmatprep.subr.bf16.mxu1 %v2772_v45 }
 0x409   :  { %2775 = vmatpush3.bf16.msra.mxu1 %v2772_v45 }
 0x46c   :  { %v2977_v46 = vpop.permute.xlu0 %2976 }
 0x46d   :  { %v2979_v51 = vunpack.i.h.bf16 %v2977_v46  ;;  %v2978_v43 = vunpack.i.l.bf16 %v2977_v46 }
 0x46f   :  { %v2784_v58 = vpack.c.bf16 %v2979_v51, %v2978_v43 }
 0x470   :  { %v1059_v21 = vpop.permute.xlu0 %1058 }
 0x471   :  { %2785 = vmatprep.subr.bf16.mxu1 %v2784_v58 }
 0x4c6   :  { %v2494_v0 = vpop.f32.mrb[10].mxu0 }
 0x4c7   :  { %3024 = vrcp.f32 %v2494_v0  ;;  %v723_v1 = vpop.f32.mrb[11].mxu0 }
 0x4c8   :  { %3026 = vrcp.f32 %v723_v1 }
 0x4d1   :  { %v3025_v18 = vpop.eup %3024 }
 0x4d2   :  { %v3027_v26 = vpop.eup %3026  ;;  %v735_v28 = vmul.f32 %v3025_v18, %v2494_v0  ;;  %v2982_v0 = vpop.permute.xlu1 %2981 }
 0x4d3   :  { %v734_v31 = vmul.f32 %v3027_v26, %v723_v1  ;;  %v2984_v1 = vunpack.i.h.bf16 %v2982_v0  ;;  %v2983_v3 = vunpack.i.l.bf16 %v2982_v0 }
 0x4d4   :  { %v737_v48 = vsub.f32 2.0, %v735_v28 }
 0x4d5   :  { %v736_v54 = vsub.f32 2.0, %v734_v31  ;;  %v2788_v11 = vpack.c.bf16 %v2984_v1, %v2983_v3  ;;  %v2212_v1 = vld [vmem:[%s3716_s2 + $0x3] ss:$0 sm:$0xff] }
 0x4d6   :  { %v739_v22 = vmul.f32 %v3025_v18, %v737_v48 }
 0x4d7   :  { %v738_v12 = vmul.f32 %v3027_v26, %v736_v54 }
 0x4d8   :  { %v741_v10 = vmul.f32 %v3023_v9, %v739_v22  ;;  %v2204_v9 = vld [vmem:[%s3716_s2 + $0x1] ss:$0 sm:$0xff] }
 0x4d9   :  { %v740_v59 = vmul.f32 %v3021_v60, %v738_v12  ;;  %v1061_v60 = vpop.permute.xlu1 %1060 }
 0x4db   :  { %2511 = vmatprep.mubr.msk.f32.mxu0 %vm581_vm5, %v740_v59 }
 0x4dc   :  { %2512 = vmatmul.mubr.msk.f32.vlgmr.msra.gmra.mrb[12].mxu0 %vm581_vm5, %v741_v10 }
 0x5af   :  { %v2513_v5 = vpop.f32.mrb[12].mxu0 }
 0x5b0   :  { %v814_v17 = vpop.f32.mrb[13].mxu0 }
 0x5b1   :  { %2522 = vmatprep.mubr.msk.f32.mxu1 %vm85_vm0, %v814_v17  ;;  %v2780_v17 = vpack.c.bf16 %v3472_v61, %v3462_v47  ;;  %v3522_v47 = vld [vmem:[%s3716_s2 + $0x7] ss:$0 sm:$0xff] }
 0x5b2   :  { %2523 = vmatmul.mubr.msk.f32.vlgmr.msra.gmra.mrb[10].mxu1 %vm85_vm0, %v2513_v5 }
 0x5b3   :  { %2787 = vmatpush3.bf16.msra.mxu1 %v2784_v58  ;;  %2544 = vmatprep.mubr.msk.f32.mxu1 %vm85_vm0, %v1059_v21 }
 0x5b4   :  { %2789 = vmatprep.subr.bf16.mxu1 %v2788_v11 }
 0x5b7   :  { %2791 = vmatpush3.bf16.msra.mxu1 %v2788_v11 }
 0x5ba   :  { %2545 = vmatmul.mubr.msk.f32.vlgmr.msra.gmra.mrb[12].mxu1 %vm85_vm0, %v1061_v60 }
 0x5bb   :  { %2567 = vmatprep.mubr.msk.f32.mxu1 %vm201_vm1, %v3255_v33 }
 0x685   :  { %v2524_v18 = vpop.f32.mrb[10].mxu1 }
 0x686   :  { %v921_v24 = vadd.f32 %v2524_v18, %v2204_v9  ;;  %v915_v26 = vpop.f32.mrb[11].mxu1 }
 0x687   :  { %v916_v28 = vadd.f32 %v2204_v9, %v915_v26 }
 0x688   :  { %v925_v29 = vadd.f32 %v921_v24, %v3194_v8 }
 0x689   :  { %v924_v31 = vadd.f32 %v916_v28, %v3185_v6  ;;  %v2776_v6 = vpack.c.bf16 %v3460_v15, %v3458_v14 }
 0x68a   :  { %v929_v45 = vsel %vm85_vm0, %v925_v29, 0.0 }
 0x68b   :  { %930 = vadd.xlane.f32.xlu1 %v929_v45  ;;  %v926_v46 = vsel %vm85_vm0, %v924_v31, 0.0  ;;  %2777 = vmatprep.subr.bf16.mxu0 %v2776_v6 }
 0x68c   :  { %927 = vadd.xlane.f32.xlu0 %v926_v46  ;;  %2779 = vmatpush3.bf16.msra.mxu0 %v2776_v6 }
 0x68d   :  { %v2546_v0 = vpop.f32.mrb[12].mxu1  ;;  %2781 = vmatprep.subr.bf16.mxu0 %v2780_v17 }
 0x68e   :  { %v1148_v3 = vpop.f32.mrb[13].mxu1  ;;  %v3509_v5 = vadd.f32 %v2546_v0, %v2212_v1 }
 0x68f   :  { %v3511_v11 = vadd.f32 %v2212_v1, %v1148_v3 }
 0x690   :  { %2783 = vmatpush3.bf16.msra.mxu0 %v2780_v17 }
 0x691   :  { %v2985_v21 = vpack.i.bf16 %v3509_v5, %v3511_v11  ;;  %v2792_v14 = vpack.c.bf16 %v3509_v5, %v3511_v11 }
 0x693   :  { %2793 = vmatprep.subr.bf16.mxu0 %v2792_v14 }
 0x718   :  { %v931_v48 = vpop.xlane.xlu1 %930 }
 0x719   :  { %v934_v51 = vmul.f32 0.03125, %v931_v48  ;;  %v928_v43 = vpop.xlane.xlu0 %927 }
 0x71a   :  { %v933_v54 = vmul.f32 0.03125, %v928_v43 }
 0x71b   :  { %v936_v22 = vsub.f32 %v925_v29, %v934_v51  ;;  %v3527_v29 = vld [vmem:[%s3716_s2 + $0x8] ss:$0 sm:$0xff] }
 0x71c   :  { %v935_v58 = vsub.f32 %v924_v31, %v933_v54 }
 0x71d   :  { %v938_v10 = vmul.f32 %v936_v22, %v936_v22 }
 0x71e   :  { %v937_v12 = vmul.f32 %v935_v58, %v935_v58 }
 0x71f   :  { %v942_v8 = vsel %vm85_vm0, %v938_v10, 0.0 }
 0x720   :  { %v939_v59 = vsel %vm85_vm0, %v937_v12, 0.0 }
 0x721   :  { %940 = vadd.xlane.f32.xlu0 %v939_v59 }
 0x725   :  { %943 = vadd.xlane.f32.xlu0 %v942_v8 }
 0x7ae   :  { %v941_v15 = vpop.xlane.xlu0 %940 }
 0x7af   :  { %v945_v60 = vmul.f32 0.03125, %v941_v15 }
 0x7b1   :  { %v947_v9 = vadd.f32 1e-05, %v945_v60 }
 0x7b2   :  { %v944_v18 = vpop.xlane.xlu0 %943 }
 0x7b3   :  { %3028 = vrsqrt.f32 %v947_v9  ;;  %v946_v24 = vmul.f32 0.03125, %v944_v18 }
 0x7b5   :  { %v948_v26 = vadd.f32 1e-05, %v946_v24 }
 0x7b7   :  { %3030 = vrsqrt.f32 %v948_v26 }
 0x7bd   :  { %v3029_v28 = vpop.eup %3028 }
 0x7be   :  { %v951_v61 = vmul.f32 %v3029_v28, %v935_v58 }
 0x7c0   :  { %v957_v31 = vmul.f32 %v3522_v47, %v951_v61 }
 0x7c1   :  { %v3031_v45 = vpop.eup %3030 }
 0x7c2   :  { %v952_v46 = vmul.f32 %v3031_v45, %v936_v22  ;;  %v3531_v48 = vadd.f32 %v3527_v29, %v957_v31 }
 0x7c4   :  { %2533 = vmatprep.mubr.msk.f32.mxu0 %vm85_vm0, %v3531_v48  ;;  %v958_v51 = vmul.f32 %v3522_v47, %v952_v46 }
 0x7c6   :  { %v3537_v43 = vadd.f32 %v3527_v29, %v958_v51 }
 0x7c8   :  { %2534 = vmatmul.mubr.msk.f32.vlgmr.msra.gmra.mrb[14].mxu0 %vm85_vm0, %v3537_v43 }
 0x7c9   :  { %2795 = vmatpush3.bf16.msra.mxu0 %v2792_v14  ;;  %2551 = vmatprep.mubr.msk.f32.mxu0 %vm201_vm1, %v3255_v33  ;;  %v2209_v33 = vld [vmem:[%s3716_s2 + $0x2] ss:$0 sm:$0xff] }
 0x7cc   :  { %2552 = vmatmul.mubr.msk.f32.vlgmr.msra.gmra.mrb[16].mxu0 %vm201_vm1, %v3251_v27 }
 0x7cd   :  { %2554 = vmatprep.mubr.msk.f32.mxu0 %vm201_vm1, %v3253_v32 }
 0x7d0   :  { %2555 = vmatmul.mubr.msk.f32.gmra.mrb[18].mxu0 %vm201_vm1, %v3261_v34 }
 0x7d1   :  { %2557 = vmatprep.mubr.msk.f32.mxu0 %vm201_vm1, %v3265_v35 }
 0x7d4   :  { %2558 = vmatmul.mubr.msk.f32.gmra.mrb[20].mxu0 %vm201_vm1, %v3269_v36 }
 0x7d5   :  { %2560 = vmatprep.mubr.msk.f32.mxu0 %vm201_vm1, %v3275_v37 }
 0x7d8   :  { %2561 = vmatmul.mubr.msk.f32.gmra.mrb[22].mxu0 %vm201_vm1, %v3277_v38 }
 0x89b   :  { %v2535_v54 = vpop.f32.mrb[14].mxu0 }
 0x89c   :  { %v1045_v22 = vpop.f32.mrb[15].mxu0  ;;  %v1051_v46 = vadd.f32 %v2535_v54, %v2209_v33 }
 0x89d   :  { %v1046_v58 = vadd.f32 %v2209_v33, %v1045_v22 }
 0x89f   :  { %v2553_v12 = vpop.f32.mrb[16].mxu0  ;;  %2595 = vmatprep.mubr.msk.f32.mxu0 %vm85_vm0, %v1046_v58 }
 0x8a0   :  { %v1263_v59 = vmul.f32 %v2553_v12, %v3283_v39  ;;  %v1223_v10 = vpop.f32.mrb[17].mxu0 }
 0x8a1   :  { %v1262_v8 = vmul.f32 %v1223_v10, %v3332_v57 }
 0x8a3   :  { %v2800_v6 = vpack.c.bf16 %v1263_v59, %v1262_v8  ;;  %v2556_v0 = vpop.f32.mrb[18].mxu0 }
 0x8a4   :  { %v1265_v1 = vmul.f32 %v2556_v0, %v3288_v40  ;;  %v1233_v3 = vpop.f32.mrb[19].mxu0 }
 0x8a5   :  { %v1264_v17 = vmul.f32 %v1233_v3, %v3342_v63  ;;  %2802 = vmatprep.subr.msk.bf16.mxu0 %vm3338_vm2, %v2800_v6 }
 0x8a6   :  { %2805 = vmatpush3.bf16.xpose.msk.msra.mxu0 %vm3338_vm2, %v2800_v6 }
 0x8a7   :  { %v2806_v14 = vpack.c.bf16 %v1265_v1, %v1264_v17  ;;  %v2559_v15 = vpop.f32.mrb[20].mxu0 }
 0x8a8   :  { %v1267_v60 = vmul.f32 %v2559_v15, %v3290_v41  ;;  %v1243_v9 = vpop.f32.mrb[21].mxu0 }
 0x8a9   :  { %v1266_v18 = vmul.f32 %v1243_v9, %v3350_v13  ;;  %2808 = vmatprep.subr.msk.bf16.mxu0 %vm3338_vm2, %v2806_v14 }
 0x8ab   :  { %v2812_v24 = vpack.c.bf16 %v1267_v60, %v1266_v18  ;;  %v2562_v26 = vpop.f32.mrb[22].mxu0 }
 0x8ac   :  { %v1269_v28 = vmul.f32 %v2562_v26, %v3292_v42  ;;  %v1253_v61 = vpop.f32.mrb[23].mxu0 }
 0x8ad   :  { %v1268_v31 = vmul.f32 %v1253_v61, %v3356_v20 }
 0x8ae   :  { %2811 = vmatpush3.bf16.xpose.msk.msra.mxu0 %vm3338_vm2, %v2806_v14 }
 0x8af   :  { %v2818_v45 = vpack.c.bf16 %v1269_v28, %v1268_v31  ;;  %2814 = vmatprep.subr.msk.bf16.mxu0 %vm3338_vm2, %v2812_v24 }
 0x8b6   :  { %2817 = vmatpush3.bf16.xpose.msk.msra.mxu0 %vm3338_vm2, %v2812_v24 }
 0x8b7   :  { %2820 = vmatprep.subr.msk.bf16.mxu0 %vm3338_vm2, %v2818_v45 }
 0x8be   :  { %2823 = vmatpush3.bf16.xpose.msk.msra.mxu0 %vm3338_vm2, %v2818_v45 }
 0x8c5   :  { %2596 = vmatmul.mubr.msk.f32.vlgmr.msra.gmra.mrb[24].mxu0 %vm85_vm0, %v1051_v46 }
 0x998   :  { %v2597_v51 = vpop.f32.mrb[24].mxu0 }
 0x999   :  { %1500 = vrot.lane.b32.xlu0 %v2597_v51, %s3111_s23  ;;  %v1487_v22 = vpop.f32.mrb[25].mxu0 }
 0x99a   :  { %1498 = vrot.lane.b32.xlu1 %v1487_v22, %s3111_s23 }
 0xa0b   :  { %v1501_v58 = vpop.permute.xlu0 %1500 }
 0xa0c   :  { %v1499_v12 = vpop.permute.xlu1 %1498  ;;  %v1505_v59 = vsel %vm578_vm4, %v1501_v58, %v3413_v4 }
 0xa0d   :  { %v1510_v10 = vsel %vm1506_vm7, %v1505_v59, -inf  ;;  %v1504_v62 = vsel %vm577_vm6, %v1499_v12, %v3418_v7 }
 0xa0e   :  { %1511 = vmax.xlane.f32.xlu0 %v1510_v10  ;;  %v1507_v33 = vsel %vm1506_vm7, %v1504_v62, -inf }
 0xa0f   :  { %1508 = vmax.xlane.f32.xlu1 %v1507_v33 }
 0xa20   :  { %2986 = vrot.lane.b32.xlu1 %v2985_v21, %s3112_s0 }
 0xa9b   :  { %v1512_v54 = vpop.xlane.xlu0 %1511 }
 0xa9c   :  { %v1514_v8 = vsub.f32 %v1505_v59, %v1512_v54  ;;  %v1509_v6 = vpop.xlane.xlu1 %1508 }
 0xa9d   :  { %v1513_v0 = vsub.f32 %v1504_v62, %v1509_v6 }
 0xa9e   :  { %v1517_v1 = vmul.f32 1.442695, %v1514_v8 }
 0xa9f   :  { %v1515_v3 = vmul.f32 1.442695, %v1513_v0 }
 0xaa0   :  { %3032 = vpow2.f32 %v1517_v1  ;;  %v2987_v4 = vpop.permute.xlu1 %2986 }
 0xaa1   :  { %3034 = vpow2.f32 %v1515_v3  ;;  %v2989_v17 = vunpack.i.h.bf16 %v2987_v4  ;;  %v2988_v14 = vunpack.i.l.bf16 %v2987_v4 }
 0xaa3   :  { %v2796_v7 = vpack.c.bf16 %v2989_v17, %v2988_v14  ;;  %v2245_v17 = vld [vmem:[%s3716_s2 + $0x4] ss:$0 sm:$0xff] }
 0xaa5   :  { %2797 = vmatprep.subr.bf16.mxu1 %v2796_v7 }
 0xaa6   :  { %2799 = vmatpush3.bf16.msra.mxu1 %v2796_v7 }
 0xaa7   :  { %2825 = vmatprep.subr.bf16.mxu1 %v3393_v30 }
 0xaa9   :  { %2568 = vmatmul.mubr.msk.f32.vlgmr.msra.gmra.mrb[14].mxu1 %vm201_vm1, %v3251_v27 }
 0xaaa   :  { %v3601_v5 = vpop.eup %3032  ;;  %2570 = vmatprep.mubr.msk.f32.mxu1 %vm201_vm1, %v3253_v32  ;;  %2827 = vmatpush3.bf16.msra.mxu1 %v3393_v30 }
 0xaab   :  { %v3606_v11 = vpop.eup %3034  ;;  %1523 = vrot.lane.b32.xlu1 %v3601_v5, %s3111_s23  ;;  %2829 = vmatprep.subr.bf16.mxu1 %v3400_v52 }
 0xaac   :  { %1521 = vrot.lane.b32.xlu0 %v3606_v11, %s3111_s23 }
 0xaad   :  { %2571 = vmatmul.mubr.msk.f32.gmra.mrb[16].mxu1 %vm201_vm1, %v3261_v34 }
 0xaae   :  { %2573 = vmatprep.mubr.msk.f32.mxu1 %vm201_vm1, %v3265_v35  ;;  %2831 = vmatpush3.bf16.msra.mxu1 %v3400_v52 }
 0xaaf   :  { %2833 = vmatprep.subr.bf16.mxu1 %v3406_v44 }
 0xab1   :  { %2574 = vmatmul.mubr.msk.f32.gmra.mrb[18].mxu1 %vm201_vm1, %v3269_v36 }
 0xab2   :  { %2576 = vmatprep.mubr.msk.f32.mxu1 %vm201_vm1, %v3275_v37  ;;  %2835 = vmatpush3.bf16.msra.mxu1 %v3406_v44 }
 0xab3   :  { %2837 = vmatprep.subr.bf16.mxu1 %v3442_v16 }
 0xab5   :  { %2577 = vmatmul.mubr.msk.f32.gmra.mrb[20].mxu1 %vm201_vm1, %v3277_v38 }
 0xab6   :  { %2839 = vmatpush3.bf16.msra.mxu1 %v3442_v16 }
 0xb1d   :  { %v1524_v32 = vpop.permute.xlu1 %1523 }
 0xb1e   :  { %v1522_v27 = vpop.permute.xlu0 %1521 }
 0xb1f   :  { %2614 = vmatprep.mubr.msk.f32.mxu1 %vm581_vm5, %v1522_v27 }
 0xb20   :  { %2615 = vmatmul.mubr.msk.f32.vlgmr.msra.gmra.mrb[22].mxu1 %vm581_vm5, %v1524_v32 }
 0xb7c   :  { %v2569_v34 = vpop.f32.mrb[14].mxu1 }
 0xb7d   :  { %v1384_v35 = vmul.f32 %v2569_v34, %v3283_v39  ;;  %v1344_v36 = vpop.f32.mrb[15].mxu1 }
 0xb7e   :  { %v1383_v37 = vmul.f32 %v1344_v36, %v3332_v57 }
 0xb80   :  { %v2840_v30 = vpack.c.bf16 %v1384_v35, %v1383_v37  ;;  %v2572_v52 = vpop.f32.mrb[16].mxu1 }
 0xb81   :  { %v1386_v44 = vmul.f32 %v2572_v52, %v3288_v40  ;;  %v1354_v21 = vpop.f32.mrb[17].mxu1 }
 0xb82   :  { %v1385_v38 = vmul.f32 %v1354_v21, %v3342_v63  ;;  %2841 = vmatprep.subr.bf16.mxu1 %v2840_v30 }
 0xb83   :  { %2843 = vmatpush3.bf16.msra.mxu1 %v2840_v30 }
 0xb84   :  { %v2844_v16 = vpack.c.bf16 %v1386_v44, %v1385_v38  ;;  %v2575_v15 = vpop.f32.mrb[18].mxu1 }
 0xb85   :  { %v1388_v60 = vmul.f32 %v2575_v15, %v3290_v41  ;;  %v1364_v9 = vpop.f32.mrb[19].mxu1 }
 0xb86   :  { %v1387_v18 = vmul.f32 %v1364_v9, %v3350_v13  ;;  %2845 = vmatprep.subr.bf16.mxu1 %v2844_v16  ;;  %v3010_v9 = vpack.i.bf16 %v3326_v55, %v3245_v25  ;;  %v3049_v25 = vld [vmem:[#allocation4 + $0x10] sm:$0xff]  ;;  %v3050_v55 = vld [vmem:[#allocation4] sm:$0xff] }
 0xb87   :  { %2847 = vmatpush3.bf16.msra.mxu1 %v2844_v16 }
 0xb88   :  { %v2848_v39 = vpack.c.bf16 %v1388_v60, %v1387_v18  ;;  %v2578_v57 = vpop.f32.mrb[20].mxu1  ;;  %v3000_v18 = vpack.i.bf16 %v3314_v50, %v3312_v49  ;;  %v3051_v49 = vld [vmem:[#allocation4 + $0x20] sm:$0xff]  ;;  %v3052_v50 = vld [vmem:[#allocation4 + $0x30] sm:$0xff] }
 0xb89   :  { %v1390_v24 = vmul.f32 %v2578_v57, %v3292_v42  ;;  %v1374_v26 = vpop.f32.mrb[21].mxu1  ;;  %v1836_v57 = vld [vmem:[#allocation2 + $0x10] sm:$0xff] }
 0xb8a   :  { %v1389_v40 = vmul.f32 %v1374_v26, %v3356_v20  ;;  %2849 = vmatprep.subr.bf16.mxu1 %v2848_v39 }
 0xb8b   :  { %2851 = vmatpush3.bf16.msra.mxu1 %v2848_v39  ;;  %v3015_v39 = vpack.i.bf16 %v3430_v19, %v3434_v23  ;;  %v3053_v19 = vld [vmem:[#allocation4 + $0x40] sm:$0xff]  ;;  %v3054_v23 = vld [vmem:[#allocation4 + $0x50] sm:$0xff] }
 0xb8c   :  { %v2852_v63 = vpack.c.bf16 %v1390_v24, %v1389_v40  ;;  %v1837_v24 = vld [vmem:[#allocation2 + $0x28] sm:$0xff]  ;;  %v1838_v40 = vld [vmem:[#allocation2 + $0x40] sm:$0xff] }
 0xb8d   :  { %v2864_v26 = vpack.c.bf16 %v1837_v24, %v1836_v57 }
 0xb8e   :  { %2853 = vmatprep.subr.bf16.mxu1 %v2852_v63 }
 0xb8f   :  { %2855 = vmatpush3.bf16.msra.mxu1 %v2852_v63 }
 0xb90   :  { %2865 = vmatprep.subr.bf16.mxu1 %v2864_v26 }
 0xbf3   :  { %v2616_v28 = vpop.f32.mrb[22].mxu1 }
 0xbf4   :  { %3036 = vrcp.f32 %v2616_v28  ;;  %v1595_v41 = vpop.f32.mrb[23].mxu1 }
 0xbf5   :  { %3038 = vrcp.f32 %v1595_v41 }
 0xbfe   :  { %v3037_v61 = vpop.eup %3036 }
 0xbff   :  { %v3039_v13 = vpop.eup %3038  ;;  %v1607_v31 = vmul.f32 %v3037_v61, %v2616_v28  ;;  %v2872_v28 = vpack.c.bf16 %v3049_v25, %v3050_v55 }
 0xc00   :  { %v1606_v45 = vmul.f32 %v3039_v13, %v1595_v41  ;;  %v2876_v41 = vpack.c.bf16 %v3052_v50, %v3051_v49 }
 0xc01   :  { %v1609_v46 = vsub.f32 2.0, %v1607_v31 }
 0xc02   :  { %v1608_v51 = vsub.f32 2.0, %v1606_v45 }
 0xc03   :  { %v1611_v22 = vmul.f32 %v3037_v61, %v1609_v46  ;;  %v2880_v61 = vpack.c.bf16 %v3054_v23, %v3053_v19 }
 0xc04   :  { %v1610_v42 = vmul.f32 %v3039_v13, %v1608_v51 }
 0xc05   :  { %1616 = vrot.lane.b32.xlu0 %v1611_v22, %s3111_s23 }
 0xc06   :  { %1614 = vrot.lane.b32.xlu1 %v1610_v42, %s3111_s23 }
 0xc77   :  { %v1617_v20 = vpop.permute.xlu0 %1616 }
 0xc78   :  { %v1621_v58 = vmul.f32 %v3601_v5, %v1617_v20  ;;  %v1615_v12 = vpop.permute.xlu1 %1614 }
 0xc79   :  { %v1620_v59 = vmul.f32 %v3606_v11, %v1615_v12 }
 0xc7a   :  { %1626 = vrot.lane.b32.xlu0 %v1621_v58, %s3111_s23 }
 0xc7b   :  { %1624 = vrot.lane.b32.xlu1 %v1620_v59, %s3111_s23 }
 0xc7e   :  { %2996 = vrot.lane.b32.xlu0 %v3477_v2, %s3114_s1 }
 0xc7f   :  { %2991 = vrot.lane.b32.xlu1 %v3470_v56, %s3114_s1 }
 0xcec   :  { %v3648_v10 = vpop.permute.xlu0 %1626 }
 0xced   :  { %v3650_v62 = vpop.permute.xlu1 %1624 }
 0xcee   :  { %2633 = vmatprep.mubr.msk.f32.mxu1 %vm581_vm5, %v3650_v62 }
 0xcef   :  { %2634 = vmatmul.mubr.msk.f32.vlgmr.msra.gmra.mrb[24].mxu1 %vm581_vm5, %v3648_v10 }
 0xcf0   :  { %v2997_v33 = vpop.permute.xlu0 %2996  ;;  %2867 = vmatpush3.bf16.msra.mxu1 %v2864_v26 }
 0xcf1   :  { %v2992_v54 = vpop.permute.xlu1 %2991  ;;  %v2999_v8 = vunpack.i.h.bf16 %v2997_v33  ;;  %v2998_v6 = vunpack.i.l.bf16 %v2997_v33 }
 0xcf2   :  { %v2994_v0 = vunpack.i.h.bf16 %v2992_v54  ;;  %v2993_v1 = vunpack.i.l.bf16 %v2992_v54 }
 0xcf3   :  { %v2860_v3 = vpack.c.bf16 %v2999_v8, %v2998_v6 }
 0xcf4   :  { %v2856_v2 = vpack.c.bf16 %v2994_v0, %v2993_v1 }
 0xcf6   :  { %2857 = vmatprep.subr.bf16.mxu0 %v2856_v2 }
 0xcf7   :  { %2859 = vmatpush3.bf16.msra.mxu0 %v2856_v2 }
 0xcf8   :  { %2861 = vmatprep.subr.bf16.mxu0 %v2860_v3 }
 0xcfb   :  { %2863 = vmatpush3.bf16.msra.mxu0 %v2860_v3 }
 0xcfc   :  { %2873 = vmatprep.subr.bf16.mxu0 %v2872_v28 }
 0xdc2   :  { %v2635_v56 = vpop.f32.mrb[24].mxu1 }
 0xdc3   :  { %v1698_v4 = vpop.f32.mrb[25].mxu1 }
 0xdc4   :  { %2644 = vmatprep.mubr.msk.f32.mxu0 %vm85_vm0, %v1698_v4 }
 0xdc5   :  { %2645 = vmatmul.mubr.msk.f32.vlgmr.msra.gmra.mrb[26].mxu0 %vm85_vm0, %v2635_v56 }
 0xdc6   :  { %2875 = vmatpush3.bf16.msra.mxu0 %v2872_v28 }
 0xdc7   :  { %2877 = vmatprep.subr.bf16.mxu0 %v2876_v41 }
 0xdca   :  { %2879 = vmatpush3.bf16.msra.mxu0 %v2876_v41 }
 0xdcb   :  { %2881 = vmatprep.subr.bf16.mxu0 %v2880_v61 }
 0xdce   :  { %2883 = vmatpush3.bf16.msra.mxu0 %v2880_v61 }
 0xe98   :  { %v2646_v14 = vpop.f32.mrb[26].mxu0 }
 0xe99   :  { %v1801_v7 = vadd.f32 %v2646_v14, %v2245_v17  ;;  %v1795_v5 = vpop.f32.mrb[27].mxu0 }
 0xe9a   :  { %v1796_v11 = vadd.f32 %v2245_v17, %v1795_v5 }
 0xe9b   :  { %v1805_v27 = vadd.f32 %v1801_v7, %v3537_v43 }
 0xe9c   :  { %v1804_v32 = vadd.f32 %v1796_v11, %v3531_v48  ;;  %v3048_v48 = vld [vmem:[#allocation4 + $0x28] sm:$0xff] }
 0xe9d   :  { %v1809_v34 = vsel %vm85_vm0, %v1805_v27, 0.0  ;;  %v3005_v60 = vpack.i.bf16 %v3321_v53, %v3048_v48  ;;  %v1839_v53 = vld [vmem:[#allocation2 + $0x58] sm:$0xff] }
 0xe9e   :  { %1810 = vadd.xlane.f32.xlu0 %v1809_v34  ;;  %v1806_v35 = vsel %vm85_vm0, %v1804_v32, 0.0  ;;  %v2868_v63 = vpack.c.bf16 %v1839_v53, %v1838_v40 }
 0xe9f   :  { %1807 = vadd.xlane.f32.xlu1 %v1806_v35  ;;  %v3056_v35 = vld [vmem:[#allocation4 + $0x70] sm:$0xff] }
 0xea0   :  { %2869 = vmatprep.subr.bf16.mxu1 %v2868_v63 }
 0xea1   :  { %2871 = vmatpush3.bf16.msra.mxu1 %v2868_v63 }
 0xf2b   :  { %v1811_v36 = vpop.xlane.xlu0 %1810 }
 0xf2c   :  { %v1813_v37 = vmul.f32 0.03125, %v1811_v36  ;;  %v1808_v30 = vpop.xlane.xlu1 %1807 }
 0xf2d   :  { %v1812_v52 = vmul.f32 0.03125, %v1808_v30 }
 0xf2e   :  { %v1815_v44 = vsub.f32 %v1805_v27, %v1813_v37 }
 0xf2f   :  { %v1814_v21 = vsub.f32 %v1804_v32, %v1812_v52 }
 0xf30   :  { %v1817_v38 = vmul.f32 %v1815_v44, %v1815_v44 }
 0xf31   :  { %v1816_v16 = vmul.f32 %v1814_v21, %v1814_v21 }
 0xf32   :  { %v1821_v15 = vsel %vm85_vm0, %v1817_v38, 0.0 }
 0xf33   :  { %1822 = vadd.xlane.f32.xlu1 %v1821_v15  ;;  %v1818_v43 = vsel %vm85_vm0, %v1816_v16, 0.0  ;;  %v2251_v15 = vld [vmem:[%s3716_s2 + $0x6] ss:$0 sm:$0xff] }
 0xf34   :  { %1819 = vadd.xlane.f32.xlu0 %v1818_v43 }
 0xf44   :  { %3006 = vrot.lane.b32.xlu1 %v3005_v60, %s3115_s17 }
 0xf48   :  { %3011 = vrot.lane.b32.xlu1 %v3010_v9, %s3115_s17 }
 0xf4a   :  { %3001 = vrot.lane.b32.xlu0 %v3000_v18, %s3115_s17 }
 0xf4e   :  { %3016 = vrot.lane.b32.xlu0 %v3015_v39, %s3115_s17 }
 0xfc0   :  { %v1823_v13 = vpop.xlane.xlu1 %1822 }
 0xfc1   :  { %v1825_v31 = vmul.f32 0.03125, %v1823_v13  ;;  %v1820_v45 = vpop.xlane.xlu0 %1819 }
 0xfc2   :  { %v1824_v46 = vmul.f32 0.03125, %v1820_v45 }
 0xfc3   :  { %v1827_v51 = vadd.f32 1e-05, %v1825_v31 }
 0xfc4   :  { %v1826_v22 = vadd.f32 1e-05, %v1824_v46  ;;  %v3007_v59 = vpop.permute.xlu1 %3006 }
 0xfc5   :  { %3040 = vrsqrt.f32 %v1827_v51  ;;  %v3002_v42 = vpop.permute.xlu0 %3001  ;;  %v3009_v0 = vunpack.i.h.bf16 %v3007_v59  ;;  %v3008_v1 = vunpack.i.l.bf16 %v3007_v59  ;;  %v2254_v51 = vld [vmem:[%s3716_s2 + $0x9] ss:$0 sm:$0xff] }
 0xfc6   :  { %3042 = vrsqrt.f32 %v1826_v22  ;;  %v3004_v20 = vunpack.i.h.bf16 %v3002_v42  ;;  %v3003_v58 = vunpack.i.l.bf16 %v3002_v42 }
 0xfc7   :  { %v2892_v17 = vpack.c.bf16 %v3009_v0, %v3008_v1 }
 0xfc8   :  { %v2888_v12 = vpack.c.bf16 %v3004_v20, %v3003_v58  ;;  %v3012_v56 = vpop.permute.xlu1 %3011  ;;  %v2255_v20 = vld [vmem:[%s3716_s2 + $0xa] ss:$0 sm:$0xff] }
 0xfc9   :  { %v3014_v7 = vunpack.i.h.bf16 %v3012_v56  ;;  %v3013_v5 = vunpack.i.l.bf16 %v3012_v56  ;;  %v3017_v11 = vpop.permute.xlu0 %3016 }
 0xfca   :  { %2889 = vmatprep.subr.bf16.mxu1 %v2888_v12  ;;  %v3018_v32 = vunpack.i.l.bf16 %v3017_v11 }
 0xfcb   :  { %v2896_v27 = vpack.c.bf16 %v3014_v7, %v3013_v5 }
 0xfcf   :  { %v3041_v33 = vpop.eup %3040 }
 0xfd0   :  { %v3043_v54 = vpop.eup %3042  ;;  %v1831_v8 = vmul.f32 %v3041_v33, %v1815_v44 }
 0xfd1   :  { %v1830_v6 = vmul.f32 %v3043_v54, %v1814_v21 }
 0xfd2   :  { %v1833_v2 = vmul.f32 %v3522_v47, %v1831_v8 }
 0xfd3   :  { %v1832_v3 = vmul.f32 %v3522_v47, %v1830_v6  ;;  %v3019_v47 = vunpack.i.h.bf16 %v3017_v11 }
 0xfd4   :  { %v1835_v14 = vadd.f32 %v3527_v29, %v1833_v2 }
 0xfd5   :  { %v1834_v4 = vadd.f32 %v3527_v29, %v1832_v3  ;;  %v2900_v34 = vpack.c.bf16 %v3019_v47, %v3018_v32  ;;  %v3055_v29 = vld [vmem:[#allocation4 + $0x60] sm:$0xff] }
 0xfd6   :  { %v2884_v36 = vpack.c.bf16 %v3056_v35, %v3055_v29 }
 0xfd7   :  { %2655 = vmatprep.mubr.msk.f32.mxu1 %vm85_vm0, %v1834_v4 }
 0xfd8   :  { %2656 = vmatmul.mubr.msk.f32.vlgmr.msra.gmra.mrb[26].mxu1 %vm85_vm0, %v1835_v14  ;;  %2885 = vmatprep.subr.bf16.mxu0 %v2884_v36 }
 0xfd9   :  { %2891 = vmatpush3.bf16.msra.mxu1 %v2888_v12  ;;  %2693 = vmatprep.mubr.msk.f32.mxu1 %vm581_vm5, %v3650_v62  ;;  %v2248_v62 = vld [vmem:[%s3716_s2 + $0x5] ss:$0 sm:$0xff] }
 0xfda   :  { %2893 = vmatprep.subr.bf16.mxu1 %v2892_v17  ;;  %2887 = vmatpush3.bf16.msra.mxu0 %v2884_v36 }
 0xfdd   :  { %2895 = vmatpush3.bf16.msra.mxu1 %v2892_v17 }
 0xfde   :  { %2897 = vmatprep.subr.bf16.mxu1 %v2896_v27 }
 0xfe1   :  { %2899 = vmatpush3.bf16.msra.mxu1 %v2896_v27 }
 0xfe2   :  { %2901 = vmatprep.subr.bf16.mxu1 %v2900_v34 }
 0xfe5   :  { %2903 = vmatpush3.bf16.msra.mxu1 %v2900_v34 }
 0xfe8   :  { %2694 = vmatmul.mubr.msk.f32.vlgmr.msra.gmra.mrb[28].mxu1 %vm581_vm5, %v3648_v10 }
0x10ab   :  { %v2657_v37 = vpop.f32.mrb[26].mxu1 }
0x10ac   :  { %v1922_v30 = vadd.f32 %v2657_v37, %v2248_v62  ;;  %v1916_v52 = vpop.f32.mrb[27].mxu1 }
0x10ad   :  { %v1917_v44 = vadd.f32 %v2248_v62, %v1916_v52 }
0x10ae   :  { %v1926_v38 = vmax.f32 %v1922_v30, 0.0 }
0x10af   :  { %v1925_v21 = vmax.f32 %v1917_v44, 0.0 }
0x10b1   :  { %2674 = vmatprep.mubr.msk.f32.mxu0 %vm581_vm5, %v1925_v21 }
0x10b2   :  { %2675 = vmatmul.mubr.msk.f32.vlgmr.msra.gmra.mrb[28].mxu0 %vm581_vm5, %v1926_v38 }
0x10bb   :  { %v2695_v10 = vpop.f32.mrb[28].mxu1 }
0x10bc   :  { %v2142_v16 = vpop.f32.mrb[29].mxu1 }
0x1185   :  { %v2676_v43 = vpop.f32.mrb[28].mxu0 }
0x1186   :  { %v2009_v48 = vadd.f32 %v2676_v43, %v2251_v15  ;;  %v2003_v60 = vpop.f32.mrb[29].mxu0 }
0x1187   :  { %v2004_v9 = vadd.f32 %v2251_v15, %v2003_v60 }
0x1188   :  { %v2013_v18 = vadd.f32 %v2009_v48, %v1835_v14 }
0x1189   :  { %v2012_v39 = vadd.f32 %v2004_v9, %v1834_v4 }
0x118a   :  { %v2017_v57 = vsel %vm85_vm0, %v2013_v18, 0.0 }
0x118b   :  { %2018 = vadd.xlane.f32.xlu0 %v2017_v57  ;;  %v2014_v24 = vsel %vm85_vm0, %v2012_v39, 0.0 }
0x118c   :  { %2015 = vadd.xlane.f32.xlu1 %v2014_v24 }
0x1218   :  { %v2019_v26 = vpop.xlane.xlu0 %2018 }
0x1219   :  { %v2021_v40 = vmul.f32 0.03125, %v2019_v26  ;;  %v2016_v53 = vpop.xlane.xlu1 %2015 }
0x121a   :  { %v2020_v63 = vmul.f32 0.03125, %v2016_v53 }
0x121b   :  { %v2023_v25 = vsub.f32 %v2013_v18, %v2021_v40 }
0x121c   :  { %v2022_v55 = vsub.f32 %v2012_v39, %v2020_v63 }
0x121d   :  { %v2025_v28 = vmul.f32 %v2023_v25, %v2023_v25 }
0x121e   :  { %v2024_v49 = vmul.f32 %v2022_v55, %v2022_v55 }
0x121f   :  { %v2029_v50 = vsel %vm85_vm0, %v2025_v28, 0.0 }
0x1220   :  { %2030 = vadd.xlane.f32.xlu1 %v2029_v50  ;;  %v2026_v41 = vsel %vm85_vm0, %v2024_v49, 0.0 }
0x1221   :  { %2027 = vadd.xlane.f32.xlu0 %v2026_v41 }
0x1231   :  { %2155 = vrot.lane.b32.xlu1 %v2695_v10, %s3114_s1 }
0x1237   :  { %2153 = vrot.lane.b32.xlu0 %v2142_v16, %s3114_s1 }
0x12ad   :  { %v2031_v19 = vpop.xlane.xlu1 %2030 }
0x12ae   :  { %v2033_v23 = vmul.f32 0.03125, %v2031_v19  ;;  %v2028_v61 = vpop.xlane.xlu0 %2027 }
0x12af   :  { %v2032_v13 = vmul.f32 0.03125, %v2028_v61 }
0x12b0   :  { %v2035_v31 = vadd.f32 1e-05, %v2033_v23 }
0x12b1   :  { %v2034_v45 = vadd.f32 1e-05, %v2032_v13  ;;  %v2156_v54 = vpop.permute.xlu1 %2155 }
0x12b2   :  { %3044 = vrsqrt.f32 %v2035_v31  ;;  %v2154_v0 = vpop.permute.xlu0 %2153 }
0x12b3   :  { %3046 = vrsqrt.f32 %v2034_v45 }
0x12bc   :  { %v3045_v46 = vpop.eup %3044 }
0x12bd   :  { %v3047_v22 = vpop.eup %3046  ;;  %v2039_v42 = vmul.f32 %v3045_v46, %v2023_v25 }
0x12be   :  { %v2038_v58 = vmul.f32 %v3047_v22, %v2022_v55 }
0x12bf   :  { %v2045_v12 = vmul.f32 %v2254_v51, %v2039_v42 }
0x12c0   :  { %v2044_v59 = vmul.f32 %v2254_v51, %v2038_v58 }
0x12c1   :  { %v2051_v33 = vadd.f32 %v2255_v20, %v2045_v12 }
0x12c2   :  { %v2050_v8 = vadd.f32 %v2255_v20, %v2044_v59 }
0x12c3   :  { %v2160_v6 = vsel %vm85_vm0, %v2051_v33, %v2156_v54 }
0x12c4   :  { %v2162_v1 = vsel %vm581_vm5, %v2160_v6, 0.0  ;;  %v2159_v2 = vsel %vm85_vm0, %v2050_v8, %v2154_v0 }
0x12c5   :  { %2164 = vst [vmem:[%s3719_s5 + $0x8] sm:$0xff] %v2162_v1  ;;  %v2161_v3 = vsel %vm581_vm5, %v2159_v2, 0.0 }
0x12c6   :  { %2163 = vst [vmem:[%s3719_s5] sm:$0xff] %v2161_v3 }
0x12c7   :  { %2169 = vsyncpa [#allocation3], 1 }
0x12c8   :  { %2170 = vsyncpa [#allocation5], 1 }

</bundles_post_ra>
